<compile_context>
chip_gen: v7x
topology: tpu7x:2x2x1
jax: 0.10.0
libtpu: 0.0.40
codegen_flags: <defaults>
</compile_context>

<pallas_src>
import functools
import math

import jax
import jax.numpy as jnp
from jax.experimental import pallas as pl
from jax.experimental.pallas import tpu as pltpu


# --------------------------- fused forward + loss kernel ---------------------------

def _make_fused_kernel(num_gc_layers, hidden_dim, num_graphs, g_pad, e_pad, n_nodes):
    L, H, G = num_gc_layers, hidden_dim, num_graphs
    inv_n = 1.0 / n_nodes
    inv_t = 1.0 / 0.2          # NT-Xent temperature T = 0.2

    def kernel(x_ref, adj_ref, pool_ref, w1_0_ref, w_stack_ref, vecs_ref,
               w0_blk_ref, w1_proj_ref, proj_b_ref, y_ref, loss_ref):
        # Shared, VMEM-resident operands (DMA'd once, reused by BOTH views).
        AI = adj_ref[...]                    # [N, N]     bf16, A + I   (GIN eps = 0)
        P = pool_ref[...]                    # [G_pad, N] bf16, zero-padded one-hot pooling
        pb0 = proj_b_ref[pl.ds(0, 1), :]     # [1, E_pad] f32
        pb1 = proj_b_ref[pl.ds(1, 1), :]     # [1, E_pad] f32

        ys = []
        for v in range(2):                   # two augmented views, unrolled
            h = x_ref[v].astype(jnp.bfloat16)              # [N, F_pad]
            acc = jnp.zeros((g_pad, e_pad), jnp.float32)   # proj_head pre-activation acc
            for i in range(L):
                # ---- GINConv (eps=0): MLP((A+I) @ x) ----
                agg = jnp.dot(AI, h, preferred_element_type=jnp.float32)
                w1 = w1_0_ref[...] if i == 0 else w_stack_ref[2 * i - 1]
                w2 = w_stack_ref[2 * i]
                b1 = vecs_ref[pl.ds(4 * i + 0, 1), :]
                b2 = vecs_ref[pl.ds(4 * i + 1, 1), :]
                bn_w = vecs_ref[pl.ds(4 * i + 2, 1), :]
                bn_b = vecs_ref[pl.ds(4 * i + 3, 1), :]
                t = jnp.maximum(
                    jnp.dot(agg.astype(jnp.bfloat16), w1,
                            preferred_element_type=jnp.float32) + b1, 0.0)
                u = jnp.maximum(
                    jnp.dot(t.astype(jnp.bfloat16), w2,
                            preferred_element_type=jnp.float32) + b2, 0.0)
                # ---- F.relu(conv(x)) -> BatchNorm1d (training batch stats, eps=1e-5),
                #      one-pass statistics: var = E[u^2] - mean^2 ----
                mean = jnp.sum(u, axis=0, keepdims=True) * inv_n
                msq = jnp.sum(u * u, axis=0, keepdims=True) * inv_n
                var = jnp.maximum(msq - mean * mean, 0.0)
                hf = (u - mean) * jax.lax.rsqrt(var + 1e-5) * bn_w + bn_b       # [N, H]
                h = hf.astype(jnp.bfloat16)
                # ---- global_add_pool folded into proj_head W0 block i:
                #      y = concat_i(P @ h_i)  =>  y @ W0 = sum_i (P @ h_i) @ W0_blk[i] ----
                y_i = jnp.dot(P, h, preferred_element_type=jnp.float32)         # [G_pad, H]
                acc = acc + jnp.dot(y_i.astype(jnp.bfloat16), w0_blk_ref[i],
                                    preferred_element_type=jnp.float32)
            # ---- proj_head: Linear -> ReLU -> Linear (lane-dense [G_pad, E_pad] store) ----
            hid = jnp.maximum(acc + pb0, 0.0)
            yv = jnp.dot(hid.astype(jnp.bfloat16), w1_proj_ref[...],
                         preferred_element_type=jnp.float32) + pb1
            y_ref[v] = yv
            ys.append(yv)

        # ---- loss_cal: NT-Xent (T=0.2) over the two views, masked to the real G rows ----
        row_ids = jax.lax.broadcasted_iota(jnp.int32, (g_pad, 1), 0)
        row_ok = row_ids < G
        rowm = row_ok.astype(jnp.float32)

        def normalize(y):
            ns = jnp.sum(y * y, axis=-1, keepdims=True)
            return y * jax.lax.rsqrt(jnp.where(row_ok, ns, 1.0)) * rowm

        y1n, y2n = normalize(ys[0]), normalize(ys[1])
        # cosine similarities / T, contracting the LAST dims (transpose is free).  Kept in
        # f32: 1/T amplifies sim errors x5 and this matmul is only g_pad x E_pad x g_pad.
        sim = jax.lax.dot_general(y1n, y2n, (((1,), (1,)), ((), ())),
                                  preferred_element_type=jnp.float32) * inv_t   # [G_pad, G_pad]
        r2 = jax.lax.broadcasted_iota(jnp.int32, (g_pad, g_pad), 0)
        c2 = jax.lax.broadcasted_iota(jnp.int32, (g_pad, g_pad), 1)
        colm = (c2 < G).astype(jnp.float32)
        diagm = (r2 == c2).astype(jnp.float32) * colm
        e = jnp.exp(sim) * colm                                    # masked exp(sim/T)
        pos_e = jnp.sum(e * diagm, axis=-1, keepdims=True)         # exp(sim_ii/T)
        pos_s = jnp.sum(sim * diagm, axis=-1, keepdims=True)       # sim_ii/T == log(pos)
        neg = jnp.sum(e, axis=-1, keepdims=True) - pos_e
        per_row = jnp.log(neg) - pos_s                             # == -log(pos / neg)
        loss_ref[0, 0] = jnp.sum(per_row * rowm) * (1.0 / G)

    return kernel


def simclr_fused(x_views, adj_i, pool_pad, packed, *, hidden_dim, num_gc_layers,
                 num_graphs, g_pad, e_pad):
    """Fused simclr_graph_cl: both view forwards + loss_cal in ONE pallas_call.

    Returns (y_pad [2, g_pad, e_pad] f32, loss scalar).  The real embeddings are
    y_pad[v, :num_graphs, :hidden_dim * num_gc_layers].
    """
    n_nodes = x_views.shape[1]
    kernel = _make_fused_kernel(num_gc_layers, hidden_dim, num_graphs, g_pad, e_pad,
                                n_nodes)
    y_pad, loss = pl.pallas_call(
        kernel,
        out_shape=(jax.ShapeDtypeStruct((2, g_pad, e_pad), jnp.float32),
                   jax.ShapeDtypeStruct((1, 1), jnp.float32)),
        in_specs=[pl.BlockSpec(memory_space=pltpu.MemorySpace.VMEM)] * 9,
        out_specs=(pl.BlockSpec(memory_space=pltpu.MemorySpace.VMEM),
                   pl.BlockSpec(memory_space=pltpu.MemorySpace.SMEM)),
    )(x_views, adj_i, pool_pad, packed["w1_0"], packed["w_stack"], packed["vecs"],
      packed["w0_blk"], packed["w1_proj"], packed["proj_b"])
    return y_pad, loss[0, 0]


# ------------------------------ parameter init / packing ------------------------------

def xavier_uniform(key, fan_in, fan_out):
    bound = math.sqrt(6.0 / (fan_in + fan_out))
    return jax.random.uniform(key, (fan_in, fan_out), jnp.float32, -bound, bound)


def init_params(key, num_features, hidden_dim, num_gc_layers):
    embed_dim = hidden_dim * num_gc_layers
    keys = iter(jax.random.split(key, 2 * num_gc_layers + 2))
    encoder = []
    for i in range(num_gc_layers):
        d_in = num_features if i == 0 else hidden_dim
        encoder.append(dict(
            w1=xavier_uniform(next(keys), d_in, hidden_dim),
            b1=jnp.zeros((hidden_dim,), jnp.float32),
            w2=xavier_uniform(next(keys), hidden_dim, hidden_dim),
            b2=jnp.zeros((hidden_dim,), jnp.float32),
            bn_w=jnp.ones((hidden_dim,), jnp.float32),
            bn_b=jnp.zeros((hidden_dim,), jnp.float32),
        ))
    proj = dict(
        w0=xavier_uniform(next(keys), embed_dim, embed_dim),
        b0=jnp.zeros((embed_dim,), jnp.float32),
        w1=xavier_uniform(next(keys), embed_dim, embed_dim),
        b1=jnp.zeros((embed_dim,), jnp.float32),
    )
    return dict(encoder=encoder, proj=proj)


def pack_params(params, num_features, hidden_dim, num_gc_layers, f_pad, e_pad):
    """Pack the many tiny per-layer tensors into a few stacked, padded kernel inputs.

    MXU operands (weights) are stored in bf16; bias / BN vectors stay f32.  Zero padding
    is exact: padded feature rows / embedding rows+cols hit zero weights or zero inputs.
    """
    H, L = hidden_dim, num_gc_layers
    E = H * L
    enc = params["encoder"]
    w1_0 = (jnp.zeros((f_pad, H), jnp.float32)
            .at[:num_features, :].set(enc[0]["w1"]).astype(jnp.bfloat16))
    stack = [enc[0]["w2"]]
    for i in range(1, L):
        stack += [enc[i]["w1"], enc[i]["w2"]]
    w_stack = jnp.stack(stack, axis=0).astype(jnp.bfloat16)            # [2L-1, H, H]
    vec_rows = []
    for p in enc:
        vec_rows += [p["b1"], p["b2"], p["bn_w"], p["bn_b"]]
    vecs = jnp.stack(vec_rows, axis=0)                                 # [4L, H] f32
    # proj_head W0 as per-layer row blocks (pool folding), lane-padded to E_pad.
    w0_blk = jnp.zeros((L, H, e_pad), jnp.float32)
    for i in range(L):
        w0_blk = w0_blk.at[i, :, :E].set(params["proj"]["w0"][i * H:(i + 1) * H, :])
    w0_blk = w0_blk.astype(jnp.bfloat16)                               # [L, H, E_pad]
    w1_proj = (jnp.zeros((e_pad, e_pad), jnp.float32)
               .at[:E, :E].set(params["proj"]["w1"]).astype(jnp.bfloat16))
    proj_b = (jnp.zeros((2, e_pad), jnp.float32)
              .at[0, :E].set(params["proj"]["b0"])
              .at[1, :E].set(params["proj"]["b1"]))
    return dict(w1_0=w1_0, w_stack=w_stack, vecs=vecs,
                w0_blk=w0_blk, w1_proj=w1_proj, proj_b=proj_b)


# ------------------------------- pure-JAX references -------------------------------

def _hdot(a, b):
    return jnp.dot(a, b, precision=jax.lax.Precision.HIGHEST)


def forward_reference(x, adj, pool_mat, params):
    h = x
    xs = []
    for p in params["encoder"]:
        agg = _hdot(adj, h) + h
        t = jnp.maximum(_hdot(agg, p["w1"]) + p["b1"], 0.0)
        u = jnp.maximum(_hdot(t, p["w2"]) + p["b2"], 0.0)
        mean = u.mean(axis=0, keepdims=True)
        var = jnp.mean((u - mean) ** 2, axis=0, keepdims=True)
        h = (u - mean) / jnp.sqrt(var + 1e-5) * p["bn_w"] + p["bn_b"]
        xs.append(h)
    y = _hdot(pool_mat, jnp.concatenate(xs, axis=1))
    pp = params["proj"]
    hid = jnp.maximum(_hdot(y, pp["w0"]) + pp["b0"], 0.0)
    return _hdot(hid, pp["w1"]) + pp["b1"]


def loss_reference(x, x_aug):
    T = 0.2
    xn = jnp.linalg.norm(x, axis=1)
    xan = jnp.linalg.norm(x_aug, axis=1)
    sim = _hdot(x, x_aug.T) / (xn[:, None] * xan[None, :])
    sim = jnp.exp(sim / T)
    pos = jnp.diag(sim)
    return -jnp.log(pos / (sim.sum(axis=1) - pos)).mean()


# ----------------------------------- main -----------------------------------

if __name__ == "__main__":
    # small, module-consistent shapes
    num_features = 4
    hidden_dim = 32
    num_gc_layers = 3
    num_graphs = 2
    nodes_per_graph = 8
    N = num_graphs * nodes_per_graph               # 16 nodes
    embed_dim = hidden_dim * num_gc_layers         # 96
    F_PAD = 8                                      # feature dim padded to sublanes
    G_PAD = 8                                      # graph rows padded to sublanes
    E_PAD = 128                                    # embedding dim padded to full lanes

    key = jax.random.PRNGKey(0)
    k_x1, k_x2, k_params = jax.random.split(key, 3)

    # two "views" of the node features (GraphCL augmentation emulated with feature noise)
    x1 = jax.random.normal(k_x1, (N, num_features), jnp.float32)
    x2 = x1 + 0.1 * jax.random.normal(k_x2, (N, num_features), jnp.float32)

    # edge_index: bidirectional ring within each graph
    edges = []
    for gi in range(num_graphs):
        base = gi * nodes_per_graph
        for i in range(nodes_per_graph):
            a = base + i
            b = base + (i + 1) % nodes_per_graph
            edges.append((a, b))
            edges.append((b, a))
    edge_index = jnp.array(edges, dtype=jnp.int32).T                                   # [2, 32]
    batch = jnp.repeat(jnp.arange(num_graphs, dtype=jnp.int32), nodes_per_graph)       # [16]

    # ---- dataset-constant glue, built ONCE on the host (hoisted out of the hot path) ----
    src, dst = edge_index[0], edge_index[1]
    adj = jnp.zeros((N, N), jnp.float32).at[dst, src].add(1.0)          # A[i,j]=1 for j->i
    adj_i = (adj + jnp.eye(N, dtype=jnp.float32)).astype(jnp.bfloat16)  # GIN eps=0: (A+I)@x
    pool_mat = (jnp.arange(num_graphs)[:, None] == batch[None, :]).astype(jnp.float32)  # [G, N]
    pool_pad = (jnp.zeros((G_PAD, N), jnp.float32)
                .at[:num_graphs, :].set(pool_mat).astype(jnp.bfloat16))
    x_views = (jnp.zeros((2, N, F_PAD), jnp.float32)
               .at[0, :, :num_features].set(x1)
               .at[1, :, :num_features].set(x2))

    params = init_params(k_params, num_features, hidden_dim, num_gc_layers)
    packed = pack_params(params, num_features, hidden_dim, num_gc_layers, F_PAD, E_PAD)

    run = jax.jit(functools.partial(
        simclr_fused, hidden_dim=hidden_dim, num_gc_layers=num_gc_layers,
        num_graphs=num_graphs, g_pad=G_PAD, e_pad=E_PAD))

    # ONE call: forward(data), forward(data_aug), loss_cal(y, y_aug)
    y_pad, loss = run(x_views, adj_i, pool_pad, packed)
    jax.block_until_ready((y_pad, loss))

    y1 = y_pad[0, :num_graphs, :embed_dim]
    y2 = y_pad[1, :num_graphs, :embed_dim]

    # ---- pure-JAX reference checks ----
    y1_ref = forward_reference(x1, adj, pool_mat, params)
    y2_ref = forward_reference(x2, adj, pool_mat, params)
    # exact NT-Xent evaluated on the kernel's own embeddings (validates the fused loss math)
    loss_on_kernel_y = loss_reference(y1, y2)

    def rel_err(a, b):
        return float(jnp.linalg.norm(a - b) / (jnp.linalg.norm(b) + 1e-12))

    assert bool(jnp.all(jnp.isfinite(y_pad))) and bool(jnp.isfinite(loss))
    # forward vs f32 reference: bf16 MXU operands -> allow a few percent relative error
    assert rel_err(y1, y1_ref) < 8e-2, rel_err(y1, y1_ref)
    assert rel_err(y2, y2_ref) < 8e-2, rel_err(y2, y2_ref)
    # the in-kernel (f32) NT-Xent must match the exact formula on the same embeddings
    assert abs(float(loss) - float(loss_on_kernel_y)) < 5e-3
    print("KERNEL_OK")
</pallas_src>

<mosaic_0001>
module attributes {stable_mosaic.version = 11 : i64} {
  func.func @kernel(%arg0: memref<2x16x8xf32, #tpu.memory_space<vmem>>, %arg1: memref<16x16xbf16, #tpu.memory_space<vmem>>, %arg2: memref<8x16xbf16, #tpu.memory_space<vmem>>, %arg3: memref<8x32xbf16, #tpu.memory_space<vmem>>, %arg4: memref<5x32x32xbf16, #tpu.memory_space<vmem>>, %arg5: memref<12x32xf32, #tpu.memory_space<vmem>>, %arg6: memref<3x32x128xbf16, #tpu.memory_space<vmem>>, %arg7: memref<128x128xbf16, #tpu.memory_space<vmem>>, %arg8: memref<2x128xf32, #tpu.memory_space<vmem>>, %arg9: memref<2x8x128xf32, #tpu.memory_space<vmem>>, %arg10: memref<1x1xf32, #tpu.memory_space<smem>>) attributes {dimension_semantics = [], scalar_prefetch = 0 : i64, scratch_operands = 0 : i64, tpu.core_type = #tpu.core_type<tc>} {
    %c0 = arith.constant 0 : index
    %c0_0 = arith.constant 0 : index
    %0 = vector.load %arg1[%c0, %c0_0] : memref<16x16xbf16, #tpu.memory_space<vmem>>, vector<16x16xbf16>
    %c0_1 = arith.constant 0 : index
    %c0_2 = arith.constant 0 : index
    %1 = vector.load %arg2[%c0_1, %c0_2] : memref<8x16xbf16, #tpu.memory_space<vmem>>, vector<8x16xbf16>
    %c0_3 = arith.constant 0 : index
    %c0_4 = arith.constant 0 : index
    %2 = vector.load %arg8[%c0_3, %c0_4] : memref<2x128xf32, #tpu.memory_space<vmem>>, vector<1x128xf32>
    %c1 = arith.constant 1 : index
    %c0_5 = arith.constant 0 : index
    %3 = vector.load %arg8[%c1, %c0_5] : memref<2x128xf32, #tpu.memory_space<vmem>>, vector<1x128xf32>
    %c0_6 = arith.constant 0 : index
    %c0_7 = arith.constant 0 : index
    %c0_8 = arith.constant 0 : index
    %4 = vector.load %arg0[%c0_6, %c0_7, %c0_8] : memref<2x16x8xf32, #tpu.memory_space<vmem>>, vector<1x16x8xf32>
    %5 = vector.shape_cast %4 : vector<1x16x8xf32> to vector<16x8xf32>
    %6 = arith.truncf %5 : vector<16x8xf32> to vector<16x8xbf16>
    %cst = arith.constant 0.000000e+00 : f32
    %7 = vector.broadcast %cst : f32 to vector<8x128xf32>
    %cst_9 = arith.constant dense<0.000000e+00> : vector<16x8xf32>
    %8 = tpu.matmul %0, %6, %cst_9 {dimension_numbers = #tpu.dot_dimension_numbers<[1], [0], [0], [1], [0, 0, 1, 1], [], []>} : vector<16x16xbf16>, vector<16x8xbf16>, vector<16x8xf32> -> vector<16x8xf32>
    %c0_10 = arith.constant 0 : index
    %c0_11 = arith.constant 0 : index
    %9 = vector.load %arg3[%c0_10, %c0_11] : memref<8x32xbf16, #tpu.memory_space<vmem>>, vector<8x32xbf16>
    %c0_12 = arith.constant 0 : index
    %c0_13 = arith.constant 0 : index
    %c0_14 = arith.constant 0 : index
    %10 = vector.load %arg4[%c0_12, %c0_13, %c0_14] : memref<5x32x32xbf16, #tpu.memory_space<vmem>>, vector<1x32x32xbf16>
    %11 = vector.shape_cast %10 : vector<1x32x32xbf16> to vector<32x32xbf16>
    %c0_15 = arith.constant 0 : index
    %c0_16 = arith.constant 0 : index
    %12 = vector.load %arg5[%c0_15, %c0_16] : memref<12x32xf32, #tpu.memory_space<vmem>>, vector<1x32xf32>
    %c1_17 = arith.constant 1 : index
    %c0_18 = arith.constant 0 : index
    %13 = vector.load %arg5[%c1_17, %c0_18] : memref<12x32xf32, #tpu.memory_space<vmem>>, vector<1x32xf32>
    %c2 = arith.constant 2 : index
    %c0_19 = arith.constant 0 : index
    %14 = vector.load %arg5[%c2, %c0_19] : memref<12x32xf32, #tpu.memory_space<vmem>>, vector<1x32xf32>
    %c3 = arith.constant 3 : index
    %c0_20 = arith.constant 0 : index
    %15 = vector.load %arg5[%c3, %c0_20] : memref<12x32xf32, #tpu.memory_space<vmem>>, vector<1x32xf32>
    %16 = arith.truncf %8 : vector<16x8xf32> to vector<16x8xbf16>
    %cst_21 = arith.constant dense<0.000000e+00> : vector<16x32xf32>
    %17 = tpu.matmul %16, %9, %cst_21 {dimension_numbers = #tpu.dot_dimension_numbers<[1], [0], [0], [1], [0, 0, 1, 1], [], []>} : vector<16x8xbf16>, vector<8x32xbf16>, vector<16x32xf32> -> vector<16x32xf32>
    %18 = vector.broadcast %12 : vector<1x32xf32> to vector<16x32xf32>
    %19 = arith.addf %17, %18 : vector<16x32xf32>
    %cst_22 = arith.constant 0.000000e+00 : f32
    %20 = vector.broadcast %cst_22 : f32 to vector<16x32xf32>
    %21 = arith.maximumf %19, %20 : vector<16x32xf32>
    %22 = arith.truncf %21 : vector<16x32xf32> to vector<16x32xbf16>
    %cst_23 = arith.constant dense<0.000000e+00> : vector<16x32xf32>
    %23 = tpu.matmul %22, %11, %cst_23 {dimension_numbers = #tpu.dot_dimension_numbers<[1], [0], [0], [1], [0, 0, 1, 1], [], []>} : vector<16x32xbf16>, vector<32x32xbf16>, vector<16x32xf32> -> vector<16x32xf32>
    %24 = vector.broadcast %13 : vector<1x32xf32> to vector<16x32xf32>
    %25 = arith.addf %23, %24 : vector<16x32xf32>
    %cst_24 = arith.constant 0.000000e+00 : f32
    %26 = vector.broadcast %cst_24 : f32 to vector<16x32xf32>
    %27 = arith.maximumf %25, %26 : vector<16x32xf32>
    %cst_25 = arith.constant dense<0.000000e+00> : vector<32xf32>
    %28 = vector.multi_reduction <add>, %27, %cst_25 [0] : vector<16x32xf32> to vector<32xf32>
    %29 = vector.shape_cast %28 : vector<32xf32> to vector<1x32xf32>
    %cst_26 = arith.constant 6.250000e-02 : f32
    %30 = vector.broadcast %cst_26 : f32 to vector<1x32xf32>
    %31 = arith.mulf %29, %30 : vector<1x32xf32>
    %32 = arith.mulf %27, %27 : vector<16x32xf32>
    %cst_27 = arith.constant dense<0.000000e+00> : vector<32xf32>
    %33 = vector.multi_reduction <add>, %32, %cst_27 [0] : vector<16x32xf32> to vector<32xf32>
    %34 = vector.shape_cast %33 : vector<32xf32> to vector<1x32xf32>
    %cst_28 = arith.constant 6.250000e-02 : f32
    %35 = vector.broadcast %cst_28 : f32 to vector<1x32xf32>
    %36 = arith.mulf %34, %35 : vector<1x32xf32>
    %37 = arith.mulf %31, %31 : vector<1x32xf32>
    %38 = arith.subf %36, %37 : vector<1x32xf32>
    %cst_29 = arith.constant 0.000000e+00 : f32
    %39 = vector.broadcast %cst_29 : f32 to vector<1x32xf32>
    %40 = arith.maximumf %38, %39 : vector<1x32xf32>
    %41 = vector.broadcast %31 : vector<1x32xf32> to vector<16x32xf32>
    %42 = arith.subf %27, %41 : vector<16x32xf32>
    %cst_30 = arith.constant 9.99999974E-6 : f32
    %43 = vector.broadcast %cst_30 : f32 to vector<1x32xf32>
    %44 = arith.addf %40, %43 : vector<1x32xf32>
    %45 = math.rsqrt %44 : vector<1x32xf32>
    %46 = vector.broadcast %45 : vector<1x32xf32> to vector<16x32xf32>
    %47 = arith.mulf %42, %46 : vector<16x32xf32>
    %48 = vector.broadcast %14 : vector<1x32xf32> to vector<16x32xf32>
    %49 = arith.mulf %47, %48 : vector<16x32xf32>
    %50 = vector.broadcast %15 : vector<1x32xf32> to vector<16x32xf32>
    %51 = arith.addf %49, %50 : vector<16x32xf32>
    %52 = arith.truncf %51 : vector<16x32xf32> to vector<16x32xbf16>
    %cst_31 = arith.constant dense<0.000000e+00> : vector<8x32xf32>
    %53 = tpu.matmul %1, %52, %cst_31 {dimension_numbers = #tpu.dot_dimension_numbers<[1], [0], [0], [1], [0, 0, 1, 1], [], []>} : vector<8x16xbf16>, vector<16x32xbf16>, vector<8x32xf32> -> vector<8x32xf32>
    %54 = arith.truncf %53 : vector<8x32xf32> to vector<8x32xbf16>
    %c0_32 = arith.constant 0 : index
    %c0_33 = arith.constant 0 : index
    %c0_34 = arith.constant 0 : index
    %55 = vector.load %arg6[%c0_32, %c0_33, %c0_34] : memref<3x32x128xbf16, #tpu.memory_space<vmem>>, vector<1x32x128xbf16>
    %56 = vector.shape_cast %55 : vector<1x32x128xbf16> to vector<32x128xbf16>
    %cst_35 = arith.constant dense<0.000000e+00> : vector<8x128xf32>
    %57 = tpu.matmul %54, %56, %cst_35 {dimension_numbers = #tpu.dot_dimension_numbers<[1], [0], [0], [1], [0, 0, 1, 1], [], []>} : vector<8x32xbf16>, vector<32x128xbf16>, vector<8x128xf32> -> vector<8x128xf32>
    %58 = arith.addf %7, %57 : vector<8x128xf32>
    %cst_36 = arith.constant dense<0.000000e+00> : vector<16x32xf32>
    %59 = tpu.matmul %0, %52, %cst_36 {dimension_numbers = #tpu.dot_dimension_numbers<[1], [0], [0], [1], [0, 0, 1, 1], [], []>} : vector<16x16xbf16>, vector<16x32xbf16>, vector<16x32xf32> -> vector<16x32xf32>
    %c1_37 = arith.constant 1 : index
    %c0_38 = arith.constant 0 : index
    %c0_39 = arith.constant 0 : index
    %60 = vector.load %arg4[%c1_37, %c0_38, %c0_39] : memref<5x32x32xbf16, #tpu.memory_space<vmem>>, vector<1x32x32xbf16>
    %61 = vector.shape_cast %60 : vector<1x32x32xbf16> to vector<32x32xbf16>
    %c2_40 = arith.constant 2 : index
    %c0_41 = arith.constant 0 : index
    %c0_42 = arith.constant 0 : index
    %62 = vector.load %arg4[%c2_40, %c0_41, %c0_42] : memref<5x32x32xbf16, #tpu.memory_space<vmem>>, vector<1x32x32xbf16>
    %63 = vector.shape_cast %62 : vector<1x32x32xbf16> to vector<32x32xbf16>
    %c4 = arith.constant 4 : index
    %c0_43 = arith.constant 0 : index
    %64 = vector.load %arg5[%c4, %c0_43] : memref<12x32xf32, #tpu.memory_space<vmem>>, vector<1x32xf32>
    %c5 = arith.constant 5 : index
    %c0_44 = arith.constant 0 : index
    %65 = vector.load %arg5[%c5, %c0_44] : memref<12x32xf32, #tpu.memory_space<vmem>>, vector<1x32xf32>
    %c6 = arith.constant 6 : index
    %c0_45 = arith.constant 0 : index
    %66 = vector.load %arg5[%c6, %c0_45] : memref<12x32xf32, #tpu.memory_space<vmem>>, vector<1x32xf32>
    %c7 = arith.constant 7 : index
    %c0_46 = arith.constant 0 : index
    %67 = vector.load %arg5[%c7, %c0_46] : memref<12x32xf32, #tpu.memory_space<vmem>>, vector<1x32xf32>
    %68 = arith.truncf %59 : vector<16x32xf32> to vector<16x32xbf16>
    %cst_47 = arith.constant dense<0.000000e+00> : vector<16x32xf32>
    %69 = tpu.matmul %68, %61, %cst_47 {dimension_numbers = #tpu.dot_dimension_numbers<[1], [0], [0], [1], [0, 0, 1, 1], [], []>} : vector<16x32xbf16>, vector<32x32xbf16>, vector<16x32xf32> -> vector<16x32xf32>
    %70 = vector.broadcast %64 : vector<1x32xf32> to vector<16x32xf32>
    %71 = arith.addf %69, %70 : vector<16x32xf32>
    %cst_48 = arith.constant 0.000000e+00 : f32
    %72 = vector.broadcast %cst_48 : f32 to vector<16x32xf32>
    %73 = arith.maximumf %71, %72 : vector<16x32xf32>
    %74 = arith.truncf %73 : vector<16x32xf32> to vector<16x32xbf16>
    %cst_49 = arith.constant dense<0.000000e+00> : vector<16x32xf32>
    %75 = tpu.matmul %74, %63, %cst_49 {dimension_numbers = #tpu.dot_dimension_numbers<[1], [0], [0], [1], [0, 0, 1, 1], [], []>} : vector<16x32xbf16>, vector<32x32xbf16>, vector<16x32xf32> -> vector<16x32xf32>
    %76 = vector.broadcast %65 : vector<1x32xf32> to vector<16x32xf32>
    %77 = arith.addf %75, %76 : vector<16x32xf32>
    %cst_50 = arith.constant 0.000000e+00 : f32
    %78 = vector.broadcast %cst_50 : f32 to vector<16x32xf32>
    %79 = arith.maximumf %77, %78 : vector<16x32xf32>
    %cst_51 = arith.constant dense<0.000000e+00> : vector<32xf32>
    %80 = vector.multi_reduction <add>, %79, %cst_51 [0] : vector<16x32xf32> to vector<32xf32>
    %81 = vector.shape_cast %80 : vector<32xf32> to vector<1x32xf32>
    %cst_52 = arith.constant 6.250000e-02 : f32
    %82 = vector.broadcast %cst_52 : f32 to vector<1x32xf32>
    %83 = arith.mulf %81, %82 : vector<1x32xf32>
    %84 = arith.mulf %79, %79 : vector<16x32xf32>
    %cst_53 = arith.constant dense<0.000000e+00> : vector<32xf32>
    %85 = vector.multi_reduction <add>, %84, %cst_53 [0] : vector<16x32xf32> to vector<32xf32>
    %86 = vector.shape_cast %85 : vector<32xf32> to vector<1x32xf32>
    %cst_54 = arith.constant 6.250000e-02 : f32
    %87 = vector.broadcast %cst_54 : f32 to vector<1x32xf32>
    %88 = arith.mulf %86, %87 : vector<1x32xf32>
    %89 = arith.mulf %83, %83 : vector<1x32xf32>
    %90 = arith.subf %88, %89 : vector<1x32xf32>
    %cst_55 = arith.constant 0.000000e+00 : f32
    %91 = vector.broadcast %cst_55 : f32 to vector<1x32xf32>
    %92 = arith.maximumf %90, %91 : vector<1x32xf32>
    %93 = vector.broadcast %83 : vector<1x32xf32> to vector<16x32xf32>
    %94 = arith.subf %79, %93 : vector<16x32xf32>
    %cst_56 = arith.constant 9.99999974E-6 : f32
    %95 = vector.broadcast %cst_56 : f32 to vector<1x32xf32>
    %96 = arith.addf %92, %95 : vector<1x32xf32>
    %97 = math.rsqrt %96 : vector<1x32xf32>
    %98 = vector.broadcast %97 : vector<1x32xf32> to vector<16x32xf32>
    %99 = arith.mulf %94, %98 : vector<16x32xf32>
    %100 = vector.broadcast %66 : vector<1x32xf32> to vector<16x32xf32>
    %101 = arith.mulf %99, %100 : vector<16x32xf32>
    %102 = vector.broadcast %67 : vector<1x32xf32> to vector<16x32xf32>
    %103 = arith.addf %101, %102 : vector<16x32xf32>
    %104 = arith.truncf %103 : vector<16x32xf32> to vector<16x32xbf16>
    %cst_57 = arith.constant dense<0.000000e+00> : vector<8x32xf32>
    %105 = tpu.matmul %1, %104, %cst_57 {dimension_numbers = #tpu.dot_dimension_numbers<[1], [0], [0], [1], [0, 0, 1, 1], [], []>} : vector<8x16xbf16>, vector<16x32xbf16>, vector<8x32xf32> -> vector<8x32xf32>
    %106 = arith.truncf %105 : vector<8x32xf32> to vector<8x32xbf16>
    %c1_58 = arith.constant 1 : index
    %c0_59 = arith.constant 0 : index
    %c0_60 = arith.constant 0 : index
    %107 = vector.load %arg6[%c1_58, %c0_59, %c0_60] : memref<3x32x128xbf16, #tpu.memory_space<vmem>>, vector<1x32x128xbf16>
    %108 = vector.shape_cast %107 : vector<1x32x128xbf16> to vector<32x128xbf16>
    %cst_61 = arith.constant dense<0.000000e+00> : vector<8x128xf32>
    %109 = tpu.matmul %106, %108, %cst_61 {dimension_numbers = #tpu.dot_dimension_numbers<[1], [0], [0], [1], [0, 0, 1, 1], [], []>} : vector<8x32xbf16>, vector<32x128xbf16>, vector<8x128xf32> -> vector<8x128xf32>
    %110 = arith.addf %58, %109 : vector<8x128xf32>
    %cst_62 = arith.constant dense<0.000000e+00> : vector<16x32xf32>
    %111 = tpu.matmul %0, %104, %cst_62 {dimension_numbers = #tpu.dot_dimension_numbers<[1], [0], [0], [1], [0, 0, 1, 1], [], []>} : vector<16x16xbf16>, vector<16x32xbf16>, vector<16x32xf32> -> vector<16x32xf32>
    %c3_63 = arith.constant 3 : index
    %c0_64 = arith.constant 0 : index
    %c0_65 = arith.constant 0 : index
    %112 = vector.load %arg4[%c3_63, %c0_64, %c0_65] : memref<5x32x32xbf16, #tpu.memory_space<vmem>>, vector<1x32x32xbf16>
    %113 = vector.shape_cast %112 : vector<1x32x32xbf16> to vector<32x32xbf16>
    %c4_66 = arith.constant 4 : index
    %c0_67 = arith.constant 0 : index
    %c0_68 = arith.constant 0 : index
    %114 = vector.load %arg4[%c4_66, %c0_67, %c0_68] : memref<5x32x32xbf16, #tpu.memory_space<vmem>>, vector<1x32x32xbf16>
    %115 = vector.shape_cast %114 : vector<1x32x32xbf16> to vector<32x32xbf16>
    %c8 = arith.constant 8 : index
    %c0_69 = arith.constant 0 : index
    %116 = vector.load %arg5[%c8, %c0_69] : memref<12x32xf32, #tpu.memory_space<vmem>>, vector<1x32xf32>
    %c9 = arith.constant 9 : index
    %c0_70 = arith.constant 0 : index
    %117 = vector.load %arg5[%c9, %c0_70] : memref<12x32xf32, #tpu.memory_space<vmem>>, vector<1x32xf32>
    %c10 = arith.constant 10 : index
    %c0_71 = arith.constant 0 : index
    %118 = vector.load %arg5[%c10, %c0_71] : memref<12x32xf32, #tpu.memory_space<vmem>>, vector<1x32xf32>
    %c11 = arith.constant 11 : index
    %c0_72 = arith.constant 0 : index
    %119 = vector.load %arg5[%c11, %c0_72] : memref<12x32xf32, #tpu.memory_space<vmem>>, vector<1x32xf32>
    %120 = arith.truncf %111 : vector<16x32xf32> to vector<16x32xbf16>
    %cst_73 = arith.constant dense<0.000000e+00> : vector<16x32xf32>
    %121 = tpu.matmul %120, %113, %cst_73 {dimension_numbers = #tpu.dot_dimension_numbers<[1], [0], [0], [1], [0, 0, 1, 1], [], []>} : vector<16x32xbf16>, vector<32x32xbf16>, vector<16x32xf32> -> vector<16x32xf32>
    %122 = vector.broadcast %116 : vector<1x32xf32> to vector<16x32xf32>
    %123 = arith.addf %121, %122 : vector<16x32xf32>
    %cst_74 = arith.constant 0.000000e+00 : f32
    %124 = vector.broadcast %cst_74 : f32 to vector<16x32xf32>
    %125 = arith.maximumf %123, %124 : vector<16x32xf32>
    %126 = arith.truncf %125 : vector<16x32xf32> to vector<16x32xbf16>
    %cst_75 = arith.constant dense<0.000000e+00> : vector<16x32xf32>
    %127 = tpu.matmul %126, %115, %cst_75 {dimension_numbers = #tpu.dot_dimension_numbers<[1], [0], [0], [1], [0, 0, 1, 1], [], []>} : vector<16x32xbf16>, vector<32x32xbf16>, vector<16x32xf32> -> vector<16x32xf32>
    %128 = vector.broadcast %117 : vector<1x32xf32> to vector<16x32xf32>
    %129 = arith.addf %127, %128 : vector<16x32xf32>
    %cst_76 = arith.constant 0.000000e+00 : f32
    %130 = vector.broadcast %cst_76 : f32 to vector<16x32xf32>
    %131 = arith.maximumf %129, %130 : vector<16x32xf32>
    %cst_77 = arith.constant dense<0.000000e+00> : vector<32xf32>
    %132 = vector.multi_reduction <add>, %131, %cst_77 [0] : vector<16x32xf32> to vector<32xf32>
    %133 = vector.shape_cast %132 : vector<32xf32> to vector<1x32xf32>
    %cst_78 = arith.constant 6.250000e-02 : f32
    %134 = vector.broadcast %cst_78 : f32 to vector<1x32xf32>
    %135 = arith.mulf %133, %134 : vector<1x32xf32>
    %136 = arith.mulf %131, %131 : vector<16x32xf32>
    %cst_79 = arith.constant dense<0.000000e+00> : vector<32xf32>
    %137 = vector.multi_reduction <add>, %136, %cst_79 [0] : vector<16x32xf32> to vector<32xf32>
    %138 = vector.shape_cast %137 : vector<32xf32> to vector<1x32xf32>
    %cst_80 = arith.constant 6.250000e-02 : f32
    %139 = vector.broadcast %cst_80 : f32 to vector<1x32xf32>
    %140 = arith.mulf %138, %139 : vector<1x32xf32>
    %141 = arith.mulf %135, %135 : vector<1x32xf32>
    %142 = arith.subf %140, %141 : vector<1x32xf32>
    %cst_81 = arith.constant 0.000000e+00 : f32
    %143 = vector.broadcast %cst_81 : f32 to vector<1x32xf32>
    %144 = arith.maximumf %142, %143 : vector<1x32xf32>
    %145 = vector.broadcast %135 : vector<1x32xf32> to vector<16x32xf32>
    %146 = arith.subf %131, %145 : vector<16x32xf32>
    %cst_82 = arith.constant 9.99999974E-6 : f32
    %147 = vector.broadcast %cst_82 : f32 to vector<1x32xf32>
    %148 = arith.addf %144, %147 : vector<1x32xf32>
    %149 = math.rsqrt %148 : vector<1x32xf32>
    %150 = vector.broadcast %149 : vector<1x32xf32> to vector<16x32xf32>
    %151 = arith.mulf %146, %150 : vector<16x32xf32>
    %152 = vector.broadcast %118 : vector<1x32xf32> to vector<16x32xf32>
    %153 = arith.mulf %151, %152 : vector<16x32xf32>
    %154 = vector.broadcast %119 : vector<1x32xf32> to vector<16x32xf32>
    %155 = arith.addf %153, %154 : vector<16x32xf32>
    %156 = arith.truncf %155 : vector<16x32xf32> to vector<16x32xbf16>
    %cst_83 = arith.constant dense<0.000000e+00> : vector<8x32xf32>
    %157 = tpu.matmul %1, %156, %cst_83 {dimension_numbers = #tpu.dot_dimension_numbers<[1], [0], [0], [1], [0, 0, 1, 1], [], []>} : vector<8x16xbf16>, vector<16x32xbf16>, vector<8x32xf32> -> vector<8x32xf32>
    %158 = arith.truncf %157 : vector<8x32xf32> to vector<8x32xbf16>
    %c2_84 = arith.constant 2 : index
    %c0_85 = arith.constant 0 : index
    %c0_86 = arith.constant 0 : index
    %159 = vector.load %arg6[%c2_84, %c0_85, %c0_86] : memref<3x32x128xbf16, #tpu.memory_space<vmem>>, vector<1x32x128xbf16>
    %160 = vector.shape_cast %159 : vector<1x32x128xbf16> to vector<32x128xbf16>
    %cst_87 = arith.constant dense<0.000000e+00> : vector<8x128xf32>
    %161 = tpu.matmul %158, %160, %cst_87 {dimension_numbers = #tpu.dot_dimension_numbers<[1], [0], [0], [1], [0, 0, 1, 1], [], []>} : vector<8x32xbf16>, vector<32x128xbf16>, vector<8x128xf32> -> vector<8x128xf32>
    %162 = arith.addf %110, %161 : vector<8x128xf32>
    %163 = vector.broadcast %2 : vector<1x128xf32> to vector<8x128xf32>
    %164 = arith.addf %162, %163 : vector<8x128xf32>
    %cst_88 = arith.constant 0.000000e+00 : f32
    %165 = vector.broadcast %cst_88 : f32 to vector<8x128xf32>
    %166 = arith.maximumf %164, %165 : vector<8x128xf32>
    %167 = arith.truncf %166 : vector<8x128xf32> to vector<8x128xbf16>
    %c0_89 = arith.constant 0 : index
    %c0_90 = arith.constant 0 : index
    %168 = vector.load %arg7[%c0_89, %c0_90] : memref<128x128xbf16, #tpu.memory_space<vmem>>, vector<128x128xbf16>
    %cst_91 = arith.constant dense<0.000000e+00> : vector<8x128xf32>
    %169 = tpu.matmul %167, %168, %cst_91 {dimension_numbers = #tpu.dot_dimension_numbers<[1], [0], [0], [1], [0, 0, 1, 1], [], []>} : vector<8x128xbf16>, vector<128x128xbf16>, vector<8x128xf32> -> vector<8x128xf32>
    %170 = vector.broadcast %3 : vector<1x128xf32> to vector<8x128xf32>
    %171 = arith.addf %169, %170 : vector<8x128xf32>
    %c0_92 = arith.constant 0 : index
    %c0_93 = arith.constant 0 : index
    %c0_94 = arith.constant 0 : index
    %172 = vector.load %arg9[%c0_92, %c0_93, %c0_94] : memref<2x8x128xf32, #tpu.memory_space<vmem>>, vector<1x8x128xf32>
    %173 = vector.shape_cast %172 : vector<1x8x128xf32> to vector<8x128xf32>
    %174 = vector.shape_cast %171 : vector<8x128xf32> to vector<1x8x128xf32>
    tpu.vector_store %arg9[%c0_92, %c0_93, %c0_94], %174 {strides = array<i32>} : memref<2x8x128xf32, #tpu.memory_space<vmem>>, vector<1x8x128xf32>,
    %c1_95 = arith.constant 1 : index
    %c0_96 = arith.constant 0 : index
    %c0_97 = arith.constant 0 : index
    %175 = vector.load %arg0[%c1_95, %c0_96, %c0_97] : memref<2x16x8xf32, #tpu.memory_space<vmem>>, vector<1x16x8xf32>
    %176 = vector.shape_cast %175 : vector<1x16x8xf32> to vector<16x8xf32>
    %177 = arith.truncf %176 : vector<16x8xf32> to vector<16x8xbf16>
    %cst_98 = arith.constant 0.000000e+00 : f32
    %178 = vector.broadcast %cst_98 : f32 to vector<8x128xf32>
    %cst_99 = arith.constant dense<0.000000e+00> : vector<16x8xf32>
    %179 = tpu.matmul %0, %177, %cst_99 {dimension_numbers = #tpu.dot_dimension_numbers<[1], [0], [0], [1], [0, 0, 1, 1], [], []>} : vector<16x16xbf16>, vector<16x8xbf16>, vector<16x8xf32> -> vector<16x8xf32>
    %c0_100 = arith.constant 0 : index
    %c0_101 = arith.constant 0 : index
    %180 = vector.load %arg3[%c0_100, %c0_101] : memref<8x32xbf16, #tpu.memory_space<vmem>>, vector<8x32xbf16>
    %c0_102 = arith.constant 0 : index
    %c0_103 = arith.constant 0 : index
    %c0_104 = arith.constant 0 : index
    %181 = vector.load %arg4[%c0_102, %c0_103, %c0_104] : memref<5x32x32xbf16, #tpu.memory_space<vmem>>, vector<1x32x32xbf16>
    %182 = vector.shape_cast %181 : vector<1x32x32xbf16> to vector<32x32xbf16>
    %c0_105 = arith.constant 0 : index
    %c0_106 = arith.constant 0 : index
    %183 = vector.load %arg5[%c0_105, %c0_106] : memref<12x32xf32, #tpu.memory_space<vmem>>, vector<1x32xf32>
    %c1_107 = arith.constant 1 : index
    %c0_108 = arith.constant 0 : index
    %184 = vector.load %arg5[%c1_107, %c0_108] : memref<12x32xf32, #tpu.memory_space<vmem>>, vector<1x32xf32>
    %c2_109 = arith.constant 2 : index
    %c0_110 = arith.constant 0 : index
    %185 = vector.load %arg5[%c2_109, %c0_110] : memref<12x32xf32, #tpu.memory_space<vmem>>, vector<1x32xf32>
    %c3_111 = arith.constant 3 : index
    %c0_112 = arith.constant 0 : index
    %186 = vector.load %arg5[%c3_111, %c0_112] : memref<12x32xf32, #tpu.memory_space<vmem>>, vector<1x32xf32>
    %187 = arith.truncf %179 : vector<16x8xf32> to vector<16x8xbf16>
    %cst_113 = arith.constant dense<0.000000e+00> : vector<16x32xf32>
    %188 = tpu.matmul %187, %180, %cst_113 {dimension_numbers = #tpu.dot_dimension_numbers<[1], [0], [0], [1], [0, 0, 1, 1], [], []>} : vector<16x8xbf16>, vector<8x32xbf16>, vector<16x32xf32> -> vector<16x32xf32>
    %189 = vector.broadcast %183 : vector<1x32xf32> to vector<16x32xf32>
    %190 = arith.addf %188, %189 : vector<16x32xf32>
    %cst_114 = arith.constant 0.000000e+00 : f32
    %191 = vector.broadcast %cst_114 : f32 to vector<16x32xf32>
    %192 = arith.maximumf %190, %191 : vector<16x32xf32>
    %193 = arith.truncf %192 : vector<16x32xf32> to vector<16x32xbf16>
    %cst_115 = arith.constant dense<0.000000e+00> : vector<16x32xf32>
    %194 = tpu.matmul %193, %182, %cst_115 {dimension_numbers = #tpu.dot_dimension_numbers<[1], [0], [0], [1], [0, 0, 1, 1], [], []>} : vector<16x32xbf16>, vector<32x32xbf16>, vector<16x32xf32> -> vector<16x32xf32>
    %195 = vector.broadcast %184 : vector<1x32xf32> to vector<16x32xf32>
    %196 = arith.addf %194, %195 : vector<16x32xf32>
    %cst_116 = arith.constant 0.000000e+00 : f32
    %197 = vector.broadcast %cst_116 : f32 to vector<16x32xf32>
    %198 = arith.maximumf %196, %197 : vector<16x32xf32>
    %cst_117 = arith.constant dense<0.000000e+00> : vector<32xf32>
    %199 = vector.multi_reduction <add>, %198, %cst_117 [0] : vector<16x32xf32> to vector<32xf32>
    %200 = vector.shape_cast %199 : vector<32xf32> to vector<1x32xf32>
    %cst_118 = arith.constant 6.250000e-02 : f32
    %201 = vector.broadcast %cst_118 : f32 to vector<1x32xf32>
    %202 = arith.mulf %200, %201 : vector<1x32xf32>
    %203 = arith.mulf %198, %198 : vector<16x32xf32>
    %cst_119 = arith.constant dense<0.000000e+00> : vector<32xf32>
    %204 = vector.multi_reduction <add>, %203, %cst_119 [0] : vector<16x32xf32> to vector<32xf32>
    %205 = vector.shape_cast %204 : vector<32xf32> to vector<1x32xf32>
    %cst_120 = arith.constant 6.250000e-02 : f32
    %206 = vector.broadcast %cst_120 : f32 to vector<1x32xf32>
    %207 = arith.mulf %205, %206 : vector<1x32xf32>
    %208 = arith.mulf %202, %202 : vector<1x32xf32>
    %209 = arith.subf %207, %208 : vector<1x32xf32>
    %cst_121 = arith.constant 0.000000e+00 : f32
    %210 = vector.broadcast %cst_121 : f32 to vector<1x32xf32>
    %211 = arith.maximumf %209, %210 : vector<1x32xf32>
    %212 = vector.broadcast %202 : vector<1x32xf32> to vector<16x32xf32>
    %213 = arith.subf %198, %212 : vector<16x32xf32>
    %cst_122 = arith.constant 9.99999974E-6 : f32
    %214 = vector.broadcast %cst_122 : f32 to vector<1x32xf32>
    %215 = arith.addf %211, %214 : vector<1x32xf32>
    %216 = math.rsqrt %215 : vector<1x32xf32>
    %217 = vector.broadcast %216 : vector<1x32xf32> to vector<16x32xf32>
    %218 = arith.mulf %213, %217 : vector<16x32xf32>
    %219 = vector.broadcast %185 : vector<1x32xf32> to vector<16x32xf32>
    %220 = arith.mulf %218, %219 : vector<16x32xf32>
    %221 = vector.broadcast %186 : vector<1x32xf32> to vector<16x32xf32>
    %222 = arith.addf %220, %221 : vector<16x32xf32>
    %223 = arith.truncf %222 : vector<16x32xf32> to vector<16x32xbf16>
    %cst_123 = arith.constant dense<0.000000e+00> : vector<8x32xf32>
    %224 = tpu.matmul %1, %223, %cst_123 {dimension_numbers = #tpu.dot_dimension_numbers<[1], [0], [0], [1], [0, 0, 1, 1], [], []>} : vector<8x16xbf16>, vector<16x32xbf16>, vector<8x32xf32> -> vector<8x32xf32>
    %225 = arith.truncf %224 : vector<8x32xf32> to vector<8x32xbf16>
    %c0_124 = arith.constant 0 : index
    %c0_125 = arith.constant 0 : index
    %c0_126 = arith.constant 0 : index
    %226 = vector.load %arg6[%c0_124, %c0_125, %c0_126] : memref<3x32x128xbf16, #tpu.memory_space<vmem>>, vector<1x32x128xbf16>
    %227 = vector.shape_cast %226 : vector<1x32x128xbf16> to vector<32x128xbf16>
    %cst_127 = arith.constant dense<0.000000e+00> : vector<8x128xf32>
    %228 = tpu.matmul %225, %227, %cst_127 {dimension_numbers = #tpu.dot_dimension_numbers<[1], [0], [0], [1], [0, 0, 1, 1], [], []>} : vector<8x32xbf16>, vector<32x128xbf16>, vector<8x128xf32> -> vector<8x128xf32>
    %229 = arith.addf %178, %228 : vector<8x128xf32>
    %cst_128 = arith.constant dense<0.000000e+00> : vector<16x32xf32>
    %230 = tpu.matmul %0, %223, %cst_128 {dimension_numbers = #tpu.dot_dimension_numbers<[1], [0], [0], [1], [0, 0, 1, 1], [], []>} : vector<16x16xbf16>, vector<16x32xbf16>, vector<16x32xf32> -> vector<16x32xf32>
    %c1_129 = arith.constant 1 : index
    %c0_130 = arith.constant 0 : index
    %c0_131 = arith.constant 0 : index
    %231 = vector.load %arg4[%c1_129, %c0_130, %c0_131] : memref<5x32x32xbf16, #tpu.memory_space<vmem>>, vector<1x32x32xbf16>
    %232 = vector.shape_cast %231 : vector<1x32x32xbf16> to vector<32x32xbf16>
    %c2_132 = arith.constant 2 : index
    %c0_133 = arith.constant 0 : index
    %c0_134 = arith.constant 0 : index
    %233 = vector.load %arg4[%c2_132, %c0_133, %c0_134] : memref<5x32x32xbf16, #tpu.memory_space<vmem>>, vector<1x32x32xbf16>
    %234 = vector.shape_cast %233 : vector<1x32x32xbf16> to vector<32x32xbf16>
    %c4_135 = arith.constant 4 : index
    %c0_136 = arith.constant 0 : index
    %235 = vector.load %arg5[%c4_135, %c0_136] : memref<12x32xf32, #tpu.memory_space<vmem>>, vector<1x32xf32>
    %c5_137 = arith.constant 5 : index
    %c0_138 = arith.constant 0 : index
    %236 = vector.load %arg5[%c5_137, %c0_138] : memref<12x32xf32, #tpu.memory_space<vmem>>, vector<1x32xf32>
    %c6_139 = arith.constant 6 : index
    %c0_140 = arith.constant 0 : index
    %237 = vector.load %arg5[%c6_139, %c0_140] : memref<12x32xf32, #tpu.memory_space<vmem>>, vector<1x32xf32>
    %c7_141 = arith.constant 7 : index
    %c0_142 = arith.constant 0 : index
    %238 = vector.load %arg5[%c7_141, %c0_142] : memref<12x32xf32, #tpu.memory_space<vmem>>, vector<1x32xf32>
    %239 = arith.truncf %230 : vector<16x32xf32> to vector<16x32xbf16>
    %cst_143 = arith.constant dense<0.000000e+00> : vector<16x32xf32>
    %240 = tpu.matmul %239, %232, %cst_143 {dimension_numbers = #tpu.dot_dimension_numbers<[1], [0], [0], [1], [0, 0, 1, 1], [], []>} : vector<16x32xbf16>, vector<32x32xbf16>, vector<16x32xf32> -> vector<16x32xf32>
    %241 = vector.broadcast %235 : vector<1x32xf32> to vector<16x32xf32>
    %242 = arith.addf %240, %241 : vector<16x32xf32>
    %cst_144 = arith.constant 0.000000e+00 : f32
    %243 = vector.broadcast %cst_144 : f32 to vector<16x32xf32>
    %244 = arith.maximumf %242, %243 : vector<16x32xf32>
    %245 = arith.truncf %244 : vector<16x32xf32> to vector<16x32xbf16>
    %cst_145 = arith.constant dense<0.000000e+00> : vector<16x32xf32>
    %246 = tpu.matmul %245, %234, %cst_145 {dimension_numbers = #tpu.dot_dimension_numbers<[1], [0], [0], [1], [0, 0, 1, 1], [], []>} : vector<16x32xbf16>, vector<32x32xbf16>, vector<16x32xf32> -> vector<16x32xf32>
    %247 = vector.broadcast %236 : vector<1x32xf32> to vector<16x32xf32>
    %248 = arith.addf %246, %247 : vector<16x32xf32>
    %cst_146 = arith.constant 0.000000e+00 : f32
    %249 = vector.broadcast %cst_146 : f32 to vector<16x32xf32>
    %250 = arith.maximumf %248, %249 : vector<16x32xf32>
    %cst_147 = arith.constant dense<0.000000e+00> : vector<32xf32>
    %251 = vector.multi_reduction <add>, %250, %cst_147 [0] : vector<16x32xf32> to vector<32xf32>
    %252 = vector.shape_cast %251 : vector<32xf32> to vector<1x32xf32>
    %cst_148 = arith.constant 6.250000e-02 : f32
    %253 = vector.broadcast %cst_148 : f32 to vector<1x32xf32>
    %254 = arith.mulf %252, %253 : vector<1x32xf32>
    %255 = arith.mulf %250, %250 : vector<16x32xf32>
    %cst_149 = arith.constant dense<0.000000e+00> : vector<32xf32>
    %256 = vector.multi_reduction <add>, %255, %cst_149 [0] : vector<16x32xf32> to vector<32xf32>
    %257 = vector.shape_cast %256 : vector<32xf32> to vector<1x32xf32>
    %cst_150 = arith.constant 6.250000e-02 : f32
    %258 = vector.broadcast %cst_150 : f32 to vector<1x32xf32>
    %259 = arith.mulf %257, %258 : vector<1x32xf32>
    %260 = arith.mulf %254, %254 : vector<1x32xf32>
    %261 = arith.subf %259, %260 : vector<1x32xf32>
    %cst_151 = arith.constant 0.000000e+00 : f32
    %262 = vector.broadcast %cst_151 : f32 to vector<1x32xf32>
    %263 = arith.maximumf %261, %262 : vector<1x32xf32>
    %264 = vector.broadcast %254 : vector<1x32xf32> to vector<16x32xf32>
    %265 = arith.subf %250, %264 : vector<16x32xf32>
    %cst_152 = arith.constant 9.99999974E-6 : f32
    %266 = vector.broadcast %cst_152 : f32 to vector<1x32xf32>
    %267 = arith.addf %263, %266 : vector<1x32xf32>
    %268 = math.rsqrt %267 : vector<1x32xf32>
    %269 = vector.broadcast %268 : vector<1x32xf32> to vector<16x32xf32>
    %270 = arith.mulf %265, %269 : vector<16x32xf32>
    %271 = vector.broadcast %237 : vector<1x32xf32> to vector<16x32xf32>
    %272 = arith.mulf %270, %271 : vector<16x32xf32>
    %273 = vector.broadcast %238 : vector<1x32xf32> to vector<16x32xf32>
    %274 = arith.addf %272, %273 : vector<16x32xf32>
    %275 = arith.truncf %274 : vector<16x32xf32> to vector<16x32xbf16>
    %cst_153 = arith.constant dense<0.000000e+00> : vector<8x32xf32>
    %276 = tpu.matmul %1, %275, %cst_153 {dimension_numbers = #tpu.dot_dimension_numbers<[1], [0], [0], [1], [0, 0, 1, 1], [], []>} : vector<8x16xbf16>, vector<16x32xbf16>, vector<8x32xf32> -> vector<8x32xf32>
    %277 = arith.truncf %276 : vector<8x32xf32> to vector<8x32xbf16>
    %c1_154 = arith.constant 1 : index
    %c0_155 = arith.constant 0 : index
    %c0_156 = arith.constant 0 : index
    %278 = vector.load %arg6[%c1_154, %c0_155, %c0_156] : memref<3x32x128xbf16, #tpu.memory_space<vmem>>, vector<1x32x128xbf16>
    %279 = vector.shape_cast %278 : vector<1x32x128xbf16> to vector<32x128xbf16>
    %cst_157 = arith.constant dense<0.000000e+00> : vector<8x128xf32>
    %280 = tpu.matmul %277, %279, %cst_157 {dimension_numbers = #tpu.dot_dimension_numbers<[1], [0], [0], [1], [0, 0, 1, 1], [], []>} : vector<8x32xbf16>, vector<32x128xbf16>, vector<8x128xf32> -> vector<8x128xf32>
    %281 = arith.addf %229, %280 : vector<8x128xf32>
    %cst_158 = arith.constant dense<0.000000e+00> : vector<16x32xf32>
    %282 = tpu.matmul %0, %275, %cst_158 {dimension_numbers = #tpu.dot_dimension_numbers<[1], [0], [0], [1], [0, 0, 1, 1], [], []>} : vector<16x16xbf16>, vector<16x32xbf16>, vector<16x32xf32> -> vector<16x32xf32>
    %c3_159 = arith.constant 3 : index
    %c0_160 = arith.constant 0 : index
    %c0_161 = arith.constant 0 : index
    %283 = vector.load %arg4[%c3_159, %c0_160, %c0_161] : memref<5x32x32xbf16, #tpu.memory_space<vmem>>, vector<1x32x32xbf16>
    %284 = vector.shape_cast %283 : vector<1x32x32xbf16> to vector<32x32xbf16>
    %c4_162 = arith.constant 4 : index
    %c0_163 = arith.constant 0 : index
    %c0_164 = arith.constant 0 : index
    %285 = vector.load %arg4[%c4_162, %c0_163, %c0_164] : memref<5x32x32xbf16, #tpu.memory_space<vmem>>, vector<1x32x32xbf16>
    %286 = vector.shape_cast %285 : vector<1x32x32xbf16> to vector<32x32xbf16>
    %c8_165 = arith.constant 8 : index
    %c0_166 = arith.constant 0 : index
    %287 = vector.load %arg5[%c8_165, %c0_166] : memref<12x32xf32, #tpu.memory_space<vmem>>, vector<1x32xf32>
    %c9_167 = arith.constant 9 : index
    %c0_168 = arith.constant 0 : index
    %288 = vector.load %arg5[%c9_167, %c0_168] : memref<12x32xf32, #tpu.memory_space<vmem>>, vector<1x32xf32>
    %c10_169 = arith.constant 10 : index
    %c0_170 = arith.constant 0 : index
    %289 = vector.load %arg5[%c10_169, %c0_170] : memref<12x32xf32, #tpu.memory_space<vmem>>, vector<1x32xf32>
    %c11_171 = arith.constant 11 : index
    %c0_172 = arith.constant 0 : index
    %290 = vector.load %arg5[%c11_171, %c0_172] : memref<12x32xf32, #tpu.memory_space<vmem>>, vector<1x32xf32>
    %291 = arith.truncf %282 : vector<16x32xf32> to vector<16x32xbf16>
    %cst_173 = arith.constant dense<0.000000e+00> : vector<16x32xf32>
    %292 = tpu.matmul %291, %284, %cst_173 {dimension_numbers = #tpu.dot_dimension_numbers<[1], [0], [0], [1], [0, 0, 1, 1], [], []>} : vector<16x32xbf16>, vector<32x32xbf16>, vector<16x32xf32> -> vector<16x32xf32>
    %293 = vector.broadcast %287 : vector<1x32xf32> to vector<16x32xf32>
    %294 = arith.addf %292, %293 : vector<16x32xf32>
    %cst_174 = arith.constant 0.000000e+00 : f32
    %295 = vector.broadcast %cst_174 : f32 to vector<16x32xf32>
    %296 = arith.maximumf %294, %295 : vector<16x32xf32>
    %297 = arith.truncf %296 : vector<16x32xf32> to vector<16x32xbf16>
    %cst_175 = arith.constant dense<0.000000e+00> : vector<16x32xf32>
    %298 = tpu.matmul %297, %286, %cst_175 {dimension_numbers = #tpu.dot_dimension_numbers<[1], [0], [0], [1], [0, 0, 1, 1], [], []>} : vector<16x32xbf16>, vector<32x32xbf16>, vector<16x32xf32> -> vector<16x32xf32>
    %299 = vector.broadcast %288 : vector<1x32xf32> to vector<16x32xf32>
    %300 = arith.addf %298, %299 : vector<16x32xf32>
    %cst_176 = arith.constant 0.000000e+00 : f32
    %301 = vector.broadcast %cst_176 : f32 to vector<16x32xf32>
    %302 = arith.maximumf %300, %301 : vector<16x32xf32>
    %cst_177 = arith.constant dense<0.000000e+00> : vector<32xf32>
    %303 = vector.multi_reduction <add>, %302, %cst_177 [0] : vector<16x32xf32> to vector<32xf32>
    %304 = vector.shape_cast %303 : vector<32xf32> to vector<1x32xf32>
    %cst_178 = arith.constant 6.250000e-02 : f32
    %305 = vector.broadcast %cst_178 : f32 to vector<1x32xf32>
    %306 = arith.mulf %304, %305 : vector<1x32xf32>
    %307 = arith.mulf %302, %302 : vector<16x32xf32>
    %cst_179 = arith.constant dense<0.000000e+00> : vector<32xf32>
    %308 = vector.multi_reduction <add>, %307, %cst_179 [0] : vector<16x32xf32> to vector<32xf32>
    %309 = vector.shape_cast %308 : vector<32xf32> to vector<1x32xf32>
    %cst_180 = arith.constant 6.250000e-02 : f32
    %310 = vector.broadcast %cst_180 : f32 to vector<1x32xf32>
    %311 = arith.mulf %309, %310 : vector<1x32xf32>
    %312 = arith.mulf %306, %306 : vector<1x32xf32>
    %313 = arith.subf %311, %312 : vector<1x32xf32>
    %cst_181 = arith.constant 0.000000e+00 : f32
    %314 = vector.broadcast %cst_181 : f32 to vector<1x32xf32>
    %315 = arith.maximumf %313, %314 : vector<1x32xf32>
    %316 = vector.broadcast %306 : vector<1x32xf32> to vector<16x32xf32>
    %317 = arith.subf %302, %316 : vector<16x32xf32>
    %cst_182 = arith.constant 9.99999974E-6 : f32
    %318 = vector.broadcast %cst_182 : f32 to vector<1x32xf32>
    %319 = arith.addf %315, %318 : vector<1x32xf32>
    %320 = math.rsqrt %319 : vector<1x32xf32>
    %321 = vector.broadcast %320 : vector<1x32xf32> to vector<16x32xf32>
    %322 = arith.mulf %317, %321 : vector<16x32xf32>
    %323 = vector.broadcast %289 : vector<1x32xf32> to vector<16x32xf32>
    %324 = arith.mulf %322, %323 : vector<16x32xf32>
    %325 = vector.broadcast %290 : vector<1x32xf32> to vector<16x32xf32>
    %326 = arith.addf %324, %325 : vector<16x32xf32>
    %327 = arith.truncf %326 : vector<16x32xf32> to vector<16x32xbf16>
    %cst_183 = arith.constant dense<0.000000e+00> : vector<8x32xf32>
    %328 = tpu.matmul %1, %327, %cst_183 {dimension_numbers = #tpu.dot_dimension_numbers<[1], [0], [0], [1], [0, 0, 1, 1], [], []>} : vector<8x16xbf16>, vector<16x32xbf16>, vector<8x32xf32> -> vector<8x32xf32>
    %329 = arith.truncf %328 : vector<8x32xf32> to vector<8x32xbf16>
    %c2_184 = arith.constant 2 : index
    %c0_185 = arith.constant 0 : index
    %c0_186 = arith.constant 0 : index
    %330 = vector.load %arg6[%c2_184, %c0_185, %c0_186] : memref<3x32x128xbf16, #tpu.memory_space<vmem>>, vector<1x32x128xbf16>
    %331 = vector.shape_cast %330 : vector<1x32x128xbf16> to vector<32x128xbf16>
    %cst_187 = arith.constant dense<0.000000e+00> : vector<8x128xf32>
    %332 = tpu.matmul %329, %331, %cst_187 {dimension_numbers = #tpu.dot_dimension_numbers<[1], [0], [0], [1], [0, 0, 1, 1], [], []>} : vector<8x32xbf16>, vector<32x128xbf16>, vector<8x128xf32> -> vector<8x128xf32>
    %333 = arith.addf %281, %332 : vector<8x128xf32>
    %334 = vector.broadcast %2 : vector<1x128xf32> to vector<8x128xf32>
    %335 = arith.addf %333, %334 : vector<8x128xf32>
    %cst_188 = arith.constant 0.000000e+00 : f32
    %336 = vector.broadcast %cst_188 : f32 to vector<8x128xf32>
    %337 = arith.maximumf %335, %336 : vector<8x128xf32>
    %338 = arith.truncf %337 : vector<8x128xf32> to vector<8x128xbf16>
    %c0_189 = arith.constant 0 : index
    %c0_190 = arith.constant 0 : index
    %339 = vector.load %arg7[%c0_189, %c0_190] : memref<128x128xbf16, #tpu.memory_space<vmem>>, vector<128x128xbf16>
    %cst_191 = arith.constant dense<0.000000e+00> : vector<8x128xf32>
    %340 = tpu.matmul %338, %339, %cst_191 {dimension_numbers = #tpu.dot_dimension_numbers<[1], [0], [0], [1], [0, 0, 1, 1], [], []>} : vector<8x128xbf16>, vector<128x128xbf16>, vector<8x128xf32> -> vector<8x128xf32>
    %341 = vector.broadcast %3 : vector<1x128xf32> to vector<8x128xf32>
    %342 = arith.addf %340, %341 : vector<8x128xf32>
    %c1_192 = arith.constant 1 : index
    %c0_193 = arith.constant 0 : index
    %c0_194 = arith.constant 0 : index
    %343 = vector.load %arg9[%c1_192, %c0_193, %c0_194] : memref<2x8x128xf32, #tpu.memory_space<vmem>>, vector<1x8x128xf32>
    %344 = vector.shape_cast %343 : vector<1x8x128xf32> to vector<8x128xf32>
    %345 = vector.shape_cast %342 : vector<8x128xf32> to vector<1x8x128xf32>
    tpu.vector_store %arg9[%c1_192, %c0_193, %c0_194], %345 {strides = array<i32>} : memref<2x8x128xf32, #tpu.memory_space<vmem>>, vector<1x8x128xf32>,
    %346 = tpu.iota {dimensions = array<i32: 0>} : vector<8x1xi32>
    %c2_i32 = arith.constant 2 : i32
    %347 = vector.broadcast %c2_i32 : i32 to vector<8x1xi32>
    %348 = arith.cmpi slt, %346, %347 : vector<8x1xi32>
    %349 = arith.extui %348 : vector<8x1xi1> to vector<8x1xi32>
    %350 = arith.sitofp %349 : vector<8x1xi32> to vector<8x1xf32>
    %351 = arith.mulf %171, %171 : vector<8x128xf32>
    %cst_195 = arith.constant dense<0.000000e+00> : vector<8xf32>
    %352 = vector.multi_reduction <add>, %351, %cst_195 [1] : vector<8x128xf32> to vector<8xf32>
    %353 = vector.shape_cast %352 : vector<8xf32> to vector<8x1xf32>
    %cst_196 = arith.constant 1.000000e+00 : f32
    %354 = vector.broadcast %cst_196 : f32 to vector<8x1xf32>
    %355 = arith.select %348, %353, %354 : vector<8x1xi1>, vector<8x1xf32>
    %356 = math.rsqrt %355 : vector<8x1xf32>
    %357 = vector.broadcast %356 : vector<8x1xf32> to vector<8x128xf32>
    %358 = arith.mulf %171, %357 : vector<8x128xf32>
    %359 = vector.broadcast %350 : vector<8x1xf32> to vector<8x128xf32>
    %360 = arith.mulf %358, %359 : vector<8x128xf32>
    %361 = arith.mulf %342, %342 : vector<8x128xf32>
    %cst_197 = arith.constant dense<0.000000e+00> : vector<8xf32>
    %362 = vector.multi_reduction <add>, %361, %cst_197 [1] : vector<8x128xf32> to vector<8xf32>
    %363 = vector.shape_cast %362 : vector<8xf32> to vector<8x1xf32>
    %cst_198 = arith.constant 1.000000e+00 : f32
    %364 = vector.broadcast %cst_198 : f32 to vector<8x1xf32>
    %365 = arith.select %348, %363, %364 : vector<8x1xi1>, vector<8x1xf32>
    %366 = math.rsqrt %365 : vector<8x1xf32>
    %367 = vector.broadcast %366 : vector<8x1xf32> to vector<8x128xf32>
    %368 = arith.mulf %342, %367 : vector<8x128xf32>
    %369 = vector.broadcast %350 : vector<8x1xf32> to vector<8x128xf32>
    %370 = arith.mulf %368, %369 : vector<8x128xf32>
    %cst_199 = arith.constant dense<0.000000e+00> : vector<8x8xf32>
    %371 = tpu.matmul %360, %370, %cst_199 {dimension_numbers = #tpu.dot_dimension_numbers<[1], [1], [0], [0], [0, 0, 1, 0], [], []>} : vector<8x128xf32>, vector<8x128xf32>, vector<8x8xf32> -> vector<8x8xf32>
    %cst_200 = arith.constant 5.000000e+00 : f32
    %372 = vector.broadcast %cst_200 : f32 to vector<8x8xf32>
    %373 = arith.mulf %371, %372 : vector<8x8xf32>
    %374 = tpu.iota {dimensions = array<i32: 0>} : vector<8x8xi32>
    %375 = tpu.iota {dimensions = array<i32: 1>} : vector<8x8xi32>
    %c2_i32_201 = arith.constant 2 : i32
    %376 = vector.broadcast %c2_i32_201 : i32 to vector<8x8xi32>
    %377 = arith.cmpi slt, %375, %376 : vector<8x8xi32>
    %378 = arith.extui %377 : vector<8x8xi1> to vector<8x8xi32>
    %379 = arith.sitofp %378 : vector<8x8xi32> to vector<8x8xf32>
    %380 = arith.cmpi eq, %374, %375 : vector<8x8xi32>
    %381 = arith.extui %380 : vector<8x8xi1> to vector<8x8xi32>
    %382 = arith.sitofp %381 : vector<8x8xi32> to vector<8x8xf32>
    %383 = arith.mulf %382, %379 : vector<8x8xf32>
    %384 = math.exp %373 : vector<8x8xf32>
    %385 = arith.mulf %384, %379 : vector<8x8xf32>
    %386 = arith.mulf %385, %383 : vector<8x8xf32>
    %cst_202 = arith.constant dense<0.000000e+00> : vector<8xf32>
    %387 = vector.multi_reduction <add>, %386, %cst_202 [1] : vector<8x8xf32> to vector<8xf32>
    %388 = vector.shape_cast %387 : vector<8xf32> to vector<8x1xf32>
    %389 = arith.mulf %373, %383 : vector<8x8xf32>
    %cst_203 = arith.constant dense<0.000000e+00> : vector<8xf32>
    %390 = vector.multi_reduction <add>, %389, %cst_203 [1] : vector<8x8xf32> to vector<8xf32>
    %391 = vector.shape_cast %390 : vector<8xf32> to vector<8x1xf32>
    %cst_204 = arith.constant dense<0.000000e+00> : vector<8xf32>
    %392 = vector.multi_reduction <add>, %385, %cst_204 [1] : vector<8x8xf32> to vector<8xf32>
    %393 = vector.shape_cast %392 : vector<8xf32> to vector<8x1xf32>
    %394 = arith.subf %393, %388 : vector<8x1xf32>
    %395 = math.log %394 : vector<8x1xf32>
    %396 = arith.subf %395, %391 : vector<8x1xf32>
    %397 = arith.mulf %396, %350 : vector<8x1xf32>
    %398 = vector.shape_cast %397 : vector<8x1xf32> to vector<1x8x1xf32>
    %cst_205 = arith.constant dense<0.000000e+00> : vector<1xf32>
    %399 = vector.multi_reduction <add>, %398, %cst_205 [1, 2] : vector<1x8x1xf32> to vector<1xf32>
    %400 = vector.shape_cast %399 : vector<1xf32> to vector<1x1x1xf32>
    %401 = vector.extract %400[0, 0, 0] : f32 from vector<1x1x1xf32>
    %cst_206 = arith.constant 5.000000e-01 : f32
    %402 = arith.mulf %401, %cst_206 : f32
    %c0_207 = arith.constant 0 : index
    %c0_208 = arith.constant 0 : index
    %403 = memref.load %arg10[%c0_207, %c0_208] : memref<1x1xf32, #tpu.memory_space<smem>>
    memref.store %402, %arg10[%c0_207, %c0_208] : memref<1x1xf32, #tpu.memory_space<smem>>
    return
  }
}

</mosaic_0001>

<bundles_post_ra>
// kernel: simclr_fused.1
= control target key start
LH: loop header
LB: loop body
LE: loop exit
PB: predicated region body
PF: predicated region fallthrough
CT: control target
= control target key end

     0   :  { %16 = vsyncpa [#allocation3], 0  ;;  %s3692_s0 = inlined_call_operand.vmem [shape: f32[2,16,8], index: 0, kind: input, shape index: {}]   ;;  %s3693_s1 = inlined_call_operand.vmem [shape: bf16[16,16], index: 1, kind: input, shape index: {}]   ;;  %s3694_s2 = inlined_call_operand.hbm [shape: bf16[8,16], index: 2, kind: input, shape index: {}]   ;;  %s3695_s3 = inlined_call_operand.hbm [shape: bf16[8,32], index: 3, kind: input, shape index: {}]   ;;  %s3696_s4 = inlined_call_operand.hbm [shape: bf16[5,32,32], index: 4, kind: input, shape index: {}]   ;;  %s3697_s5 = inlined_call_operand.hbm [shape: f32[12,32], index: 5, kind: input, shape index: {}]   ;;  %s3698_s6 = inlined_call_operand.hbm [shape: bf16[3,32,128], index: 6, kind: input, shape index: {}]   ;;  %s3699_s7 = inlined_call_operand.vmem [shape: bf16[128,128], index: 7, kind: input, shape index: {}]   ;;  %s3700_s8 = inlined_call_operand.vmem [shape: f32[2,128], index: 8, kind: input, shape index: {}]   ;;  %s3701_s9 = inlined_call_operand.hbm [shape: f32[2,8,128], index: 9, kind: output, shape index: {0}]   ;;  %s3702_s10 = inlined_call_operand.hbm [shape: f32[1,1], index: 10, kind: output, shape index: {1}]  }
   0x1   :  { %17 = vsyncpa [#allocation7], 0 }
   0x2   :  { %18 = vsyncpa [#allocation10], 0 }
   0x3   :  { %19 = vsyncpa [#allocation4], 0 }
   0x4   :  { %20 = vsyncpa [#allocation5], 0  ;;  %s3140_s13 = smov [#allocation6]   ;;  %s3141_s15 = smov [#allocation9]  }
   0x5   :  { %s41_s14 = sshll.u32 %s3140_s13, 4  ;;  %s62_s16 = sshll.u32 %s3141_s15, 4  ;;  %s42_s14 = int_to_ptr.vmem [resolvable:$true] %s41_s14  ;;  %s3208_s16 = int_to_ptr.vmem [resolvable:$true] %s62_s16 }
   0x6   :  { %s2988_s19 = scalar_lea.hbm %s3695_s3, 64 }
   0x7   :  { %p2989_p0 = scmp.ne.s32.totalorder %s3695_s3, %s2988_s19  ;;  %p2992_p1 = scmp.lt.u32.totalorder %s2988_s19, %s3695_s3 }
   0x9   :  { %p2994_p2 = pnand %p2992_p1, %p2989_p0 }
   0xb   :  { %2997 = shalt.err (!%p2994_p2)
}
   0xc   :  { %s2998_s24 = scalar_lea.vmem %s42_s14, 64  ;;  %p3003_p4 = scmp.lt.s32.totalorder %s42_s14, %s42_s14 }
   0xd   :  { %p2999_p3 = scmp.ne.s32.totalorder %s42_s14, %s2998_s24  ;;  %p3004_p5 = scmp.lt.s32.totalorder %s2998_s24, %s2998_s24 }
   0xf   :  { %p3005_p6 = por %p3004_p5, %p3003_p4 }
  0x11   :  { %p3006_p7 = pnand %p3005_p6, %p2999_p3 }
  0x13   :  { %3009 = shalt.err (!%p3006_p7)
}
  0x14   :  { %44 = dma.hbm_to_vmem [thread:$0]  %s3695_s3, 64, %s42_s14, [#allocation7]  }
  0x15   :  { %s3010_s29 = scalar_lea.hbm %s3697_s5, 256 }
  0x16   :  { %p3011_p8 = scmp.ne.s32.totalorder %s3697_s5, %s3010_s29  ;;  %p3014_p9 = scmp.lt.u32.totalorder %s3010_s29, %s3697_s5 }
  0x18   :  { %p3016_p10 = pnand %p3014_p9, %p3011_p8 }
  0x1a   :  { %3019 = shalt.err (!%p3016_p10)
}
  0x1b   :  { %s3020_s15 = scalar_lea.vmem %s3208_s16, 256  ;;  %p3025_p12 = scmp.lt.s32.totalorder %s3208_s16, %s3208_s16 }
  0x1c   :  { %p3021_p11 = scmp.ne.s32.totalorder %s3208_s16, %s3020_s15  ;;  %p3026_p13 = scmp.lt.s32.totalorder %s3020_s15, %s3020_s15 }
  0x1e   :  { %p3027_p0 = por %p3026_p13, %p3025_p12 }
  0x20   :  { %p3028_p1 = pnand %p3027_p0, %p3021_p11 }
  0x22   :  { %3031 = shalt.err (!%p3028_p1)
}
  0x23   :  { %s3142_s3 = smov 128   ;;  %s3143_s14 = smov 8  }
  0x24   :  { %68 = dma.hbm_to_vmem [thread:$0]  %s3697_s5, 256, %s3208_s16, [#allocation10], %s3142_s3, %s3142_s3, %s3143_s14  }
  0x25   :  { %s3144_s19 = smov [#allocation2]   ;;  %s3145_s21 = smov [#allocation8]  }
  0x26   :  { %s31_s20 = sshll.u32 %s3144_s19, 4  ;;  %s50_s22 = sshll.u32 %s3145_s21, 4  ;;  %s32_s20 = int_to_ptr.vmem [resolvable:$true] %s31_s20  ;;  %s3242_s22 = int_to_ptr.vmem [resolvable:$true] %s50_s22 }
  0x27   :  { %s3032_s25 = scalar_lea.hbm %s3694_s2, 64 }
  0x28   :  { %p3033_p2 = scmp.ne.s32.totalorder %s3694_s2, %s3032_s25  ;;  %p3036_p3 = scmp.lt.u32.totalorder %s3032_s25, %s3694_s2 }
  0x2a   :  { %p3038_p4 = pnand %p3036_p3, %p3033_p2 }
  0x2c   :  { %3041 = shalt.err (!%p3038_p4)
}
  0x2d   :  { %s3042_s5 = scalar_lea.vmem %s32_s20, 64  ;;  %p3047_p6 = scmp.lt.s32.totalorder %s32_s20, %s32_s20 }
  0x2e   :  { %p3043_p5 = scmp.ne.s32.totalorder %s32_s20, %s3042_s5  ;;  %p3048_p7 = scmp.lt.s32.totalorder %s3042_s5, %s3042_s5 }
  0x30   :  { %p3049_p8 = por %p3048_p7, %p3047_p6 }
  0x32   :  { %p3050_p9 = pnand %p3049_p8, %p3043_p5 }
  0x34   :  { %3053 = shalt.err (!%p3050_p9)
}
  0x35   :  { %34 = dma.hbm_to_vmem [thread:$0]  %s3694_s2, 64, %s32_s20, [#allocation3]  }
  0x36   :  { %s3054_s13 = scalar_lea.hbm %s3696_s4, 1280 }
  0x37   :  { %p3055_p10 = scmp.ne.s32.totalorder %s3696_s4, %s3054_s13  ;;  %p3058_p11 = scmp.lt.u32.totalorder %s3054_s13, %s3696_s4 }
  0x39   :  { %p3060_p12 = pnand %p3058_p11, %p3055_p10 }
  0x3b   :  { %3063 = shalt.err (!%p3060_p12)
}
  0x3c   :  { %s3064_s21 = scalar_lea.vmem %s3242_s22, 1280  ;;  %p3069_p0 = scmp.lt.s32.totalorder %s3242_s22, %s3242_s22 }
  0x3d   :  { %p3065_p13 = scmp.ne.s32.totalorder %s3242_s22, %s3064_s21  ;;  %p3070_p1 = scmp.lt.s32.totalorder %s3064_s21, %s3064_s21 }
  0x3f   :  { %p3071_p2 = por %p3070_p1, %p3069_p0 }
  0x41   :  { %p3072_p3 = pnand %p3071_p2, %p3065_p13 }
  0x43   :  { %3075 = shalt.err (!%p3072_p3)
}
  0x44   :  { %s3146_s2 = smov 64   ;;  %s3147_s20 = smov 4  }
  0x45   :  { %56 = dma.hbm_to_vmem [thread:$0]  %s3696_s4, 1280, %s3242_s22, [#allocation7], %s3146_s2, %s3146_s2, %s3147_s20  }
  0x46   :  { %s3148_s25 = smov [#allocation11]   ;;  %s3076_s29 = scalar_lea.hbm %s3698_s6, 768 }
  0x47   :  { %s74_s26 = sshll.u32 %s3148_s25, 4  ;;  %p3077_p4 = scmp.ne.s32.totalorder %s3698_s6, %s3076_s29  ;;  %s75_s26 = int_to_ptr.vmem [resolvable:$true] %s74_s26 }
  0x48   :  { %p3080_p5 = scmp.lt.u32.totalorder %s3076_s29, %s3698_s6 }
  0x4a   :  { %p3082_p6 = pnand %p3080_p5, %p3077_p4 }
  0x4c   :  { %3085 = shalt.err (!%p3082_p6)
}
  0x4d   :  { %s3086_s12 = scalar_lea.vmem %s75_s26, 768  ;;  %p3091_p8 = scmp.lt.s32.totalorder %s75_s26, %s75_s26 }
  0x4e   :  { %p3087_p7 = scmp.ne.s32.totalorder %s75_s26, %s3086_s12  ;;  %p3092_p9 = scmp.lt.s32.totalorder %s3086_s12, %s3086_s12 }
  0x50   :  { %p3093_p10 = por %p3092_p9, %p3091_p8 }
  0x52   :  { %p3094_p11 = pnand %p3093_p10, %p3087_p7 }
  0x54   :  { %3097 = shalt.err (!%p3094_p11)
}
  0x55   :  { %80 = dma.hbm_to_vmem [thread:$0]  %s3698_s6, 768, %s75_s26, [#allocation10], %s3146_s2, %s3146_s2, %s3147_s20  }
  0x56   :  { %3130 = dma.done.wait [#allocation3], 64  }
  0x57   :  { %3131 = vsyncadd [#allocation3], 4294967232 }
  0x58   :  { %3132 = dma.done.wait [#allocation7], 1344  }
  0x59   :  { %3133 = vsyncadd [#allocation7], 4294965952 }
  0x5a   :  { %3134 = dma.done.wait [#allocation10], 1024  }
  0x5b   :  { %3135 = vsyncadd [#allocation10], 4294966272  ;;  %v3149_v0 = vmov 0.0   ;;  %vm3150_vm0 = vmmov 0   ;;  %v106_v1 = vld [vmem:[%s3692_s0] sm:$0xff]  ;;  %v107_v2 = vld [vmem:[%s3692_s0 + $0x8] sm:$0xff] }
  0x5c   :  { %2645 = vmatprep.subr.bf16.mxu1 %v3149_v0  ;;  %2647 = vmatprep.mubr.msk.bf16.mxu1 %vm3150_vm0, %v3149_v0  ;;  %v108_v3 = vpack.c.bf16 %v107_v2, %v106_v1  ;;  %v3300_v4 = vld [vmem:[%s3693_s1] sm:$0xff]   ;;  %vm114_vm1 = vcmask 130048   ;;  %vm177_vm2 = vcmask 1043456   ;;  %vm173_vm3 = vcmask 64512   ;;  %v2918_v12 = vld [vmem:[#allocation8] sm:$0xff]   ;;  %v2919_v13 = vld [vmem:[#allocation8 + $0x8] sm:$0xff]  }
  0x5d   :  { %2671 = vmatprep.subr.bf16.mxu0 %v3149_v0  ;;  %2673 = vmatprep.mubr.msk.bf16.mxu0 %vm3150_vm0, %v3149_v0  ;;  %v159_v5 = vld [vmem:[#allocation6] sm:$0xf]  ;;  %v3314_v14 = vld [vmem:[#allocation9] ss:$0 sm:$0xff]  ;;  %vm241_vm4 = vcmask 261120   ;;  %vm2393_vm8 = vcmask 7168  }
  0x5e   :  { %2646 = vmatpush3.bf16.msra.mxu1 %v108_v3  ;;  %v179_v6 = vsel %vm177_vm2, %v159_v5, 0  ;;  %v3321_v24 = vld [vmem:[#allocation9 + $0x1] ss:$0 sm:$0xff]  ;;  %v3329_v62 = vld [vmem:[#allocation9 + $0x2] ss:$0 sm:$0xff] }
  0x5f   :  { %2651 = vmatprep.subr.bf16.mxu1 %v3149_v0  ;;  %v3331_v2 = vld [vmem:[#allocation9 + $0x3] ss:$0 sm:$0xff] }
  0x61   :  { %2648 = vmatmul.mubr.msk.bf16.vlgmr.msra.gmra.mrb[0].mxu1 %vm114_vm1, %v3300_v4 }
  0x62   :  { %2653 = vmatprep.mubr.msk.bf16.mxu1 %vm3150_vm0, %v3149_v0  ;;  %2652 = vmatpush3.bf16.msra.mxu1 %v179_v6 }
  0x63   :  { %2657 = vmatprep.subr.bf16.mxu1 %v3149_v0 }
 0x134   :  { %v152_v7 = vpop.f32.mrb[0].mxu1 }
 0x135   :  { %v2649_v8 = vpop.f32.mrb[1].mxu1 }
 0x136   :  { %v155_v9 = vpop.f32.mrb[2].mxu1 }
 0x137   :  { %v168_v10 = vpack.c.bf16 %v155_v9, %v152_v7  ;;  %v2650_v11 = vpop.f32.mrb[3].mxu1  ;;  %v3337_v9 = vld [vmem:[#allocation2] sm:$0xf] }
 0x138   :  { %v2921_v11 = vld [vmem:[#allocation8 + $0x18] sm:$0xff]  }
 0x139   :  { %2654 = vmatmul.mubr.msk.bf16.vlgmr.msra.gmra.mrb[4].mxu1 %vm173_vm3, %v168_v10  ;;  %v2920_v10 = vld [vmem:[#allocation8 + $0x10] sm:$0xff]  }
 0x13a   :  { %2661 = vmatprep.mubr.msk.bf16.mxu1 %vm3150_vm0, %v3149_v0  ;;  %2658 = vmatpush3.bf16.msra.mxu1 %v2918_v12 }
 0x13b   :  { %2659 = vmatprep.subr.bf16.mxu1 %v3149_v0 }
 0x13e   :  { %2660 = vmatpush3.bf16.msra.mxu1 %v2919_v13 }
 0x13f   :  { %2665 = vmatprep.subr.bf16.mxu1 %v3149_v0 }
 0x20c   :  { %v215_v15 = vpop.f32.mrb[4].mxu1 }
 0x20d   :  { %v216_v16 = vadd.f32 %v3314_v14, %v215_v15  ;;  %v2655_v17 = vpop.f32.mrb[5].mxu1 }
 0x20e   :  { %v218_v18 = vpop.f32.mrb[6].mxu1 }
 0x20f   :  { %v219_v19 = vadd.f32 %v3314_v14, %v218_v18  ;;  %v2656_v20 = vpop.f32.mrb[7].mxu1  ;;  %v222_v21 = vmax.f32 %v216_v16, 0.0 }
 0x211   :  { %v223_v22 = vmax.f32 %v219_v19, 0.0 }
 0x213   :  { %v224_v23 = vpack.c.bf16 %v223_v22, %v222_v21  ;;  %v2922_v22 = vld [vmem:[#allocation8 + $0x20] sm:$0xff]  }
 0x215   :  { %2662 = vmatmul.mubr.msk.bf16.vlgmr.msra.gmra.mrb[8].mxu1 %vm241_vm4, %v224_v23  ;;  %v2923_v23 = vld [vmem:[#allocation8 + $0x28] sm:$0xff]  }
 0x216   :  { %2667 = vmatprep.mubr.msk.bf16.mxu1 %vm3150_vm0, %v3149_v0 }
 0x2e8   :  { %v279_v25 = vpop.f32.mrb[8].mxu1 }
 0x2e9   :  { %v280_v26 = vadd.f32 %v3321_v24, %v279_v25  ;;  %v2663_v27 = vpop.f32.mrb[9].mxu1  ;;  %v3358_v25 = vld [vmem:[#allocation9 + $0x4] ss:$0 sm:$0xff] }
 0x2ea   :  { %v282_v28 = vpop.f32.mrb[10].mxu1 }
 0x2eb   :  { %v286_v29 = vmax.f32 %v280_v26, 0.0  ;;  %v283_v30 = vadd.f32 %v3321_v24, %v282_v28  ;;  %v2664_v31 = vpop.f32.mrb[11].mxu1 }
 0x2ed   :  { %v298_v32 = vmul.f32 %v286_v29, %v286_v29  ;;  %v287_v33 = vmax.f32 %v283_v30, 0.0  ;;  %v288_v34 = vsel %vm241_vm4, %v286_v29, 0.0 }
 0x2ef   :  { %v289_v35 = vsel %vm241_vm4, %v287_v33, 0.0  ;;  %v299_v36 = vmul.f32 %v287_v33, %v287_v33  ;;  %v300_v38 = vsel %vm241_vm4, %v298_v32, 0.0 }
 0x2f0   :  { %v290_v37 = vadd.f32 %v289_v35, %v288_v34  ;;  %v2926_v35 = vld [vmem:[#allocation11 + $0x10] sm:$0xff]  }
 0x2f1   :  { %v301_v39 = vsel %vm241_vm4, %v299_v36, 0.0  ;;  %v2927_v36 = vld [vmem:[#allocation11 + $0x18] sm:$0xff]  }
 0x2f2   :  { %v291_v40 = vrot.slane %v290_v37, 4  ;;  %v302_v41 = vadd.f32 %v301_v39, %v300_v38 }
 0x2f4   :  { %v292_v42 = vadd.f32 %v291_v40, %v290_v37  ;;  %v303_v43 = vrot.slane %v302_v41, 4  ;;  %v3367_v37 = vld [vmem:[#allocation9 + $0x5] ss:$0 sm:$0xff] }
 0x2f6   :  { %v293_v44 = vrot.slane %v292_v42, 2  ;;  %v304_v45 = vadd.f32 %v303_v43, %v302_v41 }
 0x2f8   :  { %v294_v46 = vadd.f32 %v293_v44, %v292_v42  ;;  %v305_v47 = vrot.slane %v304_v45, 2 }
 0x2fa   :  { %v295_v48 = vrot.slane %v294_v46, 1  ;;  %v306_v49 = vadd.f32 %v305_v47, %v304_v45 }
 0x2fc   :  { %v296_v50 = vadd.f32 %v295_v48, %v294_v46  ;;  %v307_v51 = vrot.slane %v306_v49, 1 }
 0x2fe   :  { %v297_v52 = vmul.f32 0.0625, %v296_v50  ;;  %v308_v53 = vadd.f32 %v307_v51, %v306_v49 }
 0x300   :  { %v309_v54 = vmul.f32 0.0625, %v308_v53  ;;  %v310_v55 = vmul.f32 %v297_v52, %v297_v52  ;;  %v313_v56 = vsub.f32 %v286_v29, %v297_v52  ;;  %v314_v57 = vsub.f32 %v287_v33, %v297_v52 }
 0x302   :  { %v311_v58 = vsub.f32 %v309_v54, %v310_v55 }
 0x304   :  { %v312_v59 = vmax.f32 %v311_v58, 0.0 }
 0x306   :  { %v315_v60 = vadd.f32 1e-05, %v312_v59 }
 0x308   :  { %2966 = vrsqrt.f32 %v315_v60 }
 0x312   :  { %v2967_v61 = vpop.eup %2966 }
 0x313   :  { %v318_v63 = vmul.f32 %v2967_v61, %v314_v57  ;;  %v317_v1 = vmul.f32 %v2967_v61, %v313_v56 }
 0x315   :  { %v324_v3 = vmul.f32 %v3329_v62, %v318_v63  ;;  %v323_v5 = vmul.f32 %v3329_v62, %v317_v1 }
 0x317   :  { %v329_v6 = vadd.f32 %v3331_v2, %v323_v5  ;;  %v330_v7 = vadd.f32 %v3331_v2, %v324_v3 }
 0x319   :  { %v331_v8 = vpack.c.bf16 %v330_v7, %v329_v6 }
 0x31b   :  { %2666 = vmatpush3.bf16.msra.mxu1 %v331_v8  ;;  %2672 = vmatpush3.bf16.msra.mxu0 %v331_v8 }
 0x31c   :  { %2677 = vmatprep.subr.bf16.mxu1 %v3149_v0  ;;  %2685 = vmatprep.subr.bf16.mxu0 %v3149_v0 }
 0x31e   :  { %2674 = vmatmul.mubr.msk.bf16.vlgmr.msra.gmra.mrb[0].mxu0 %vm114_vm1, %v3300_v4  ;;  %2668 = vmatmul.mubr.msk.bf16.vlgmr.msra.gmra.mrb[12].mxu1 %vm114_vm1, %v3337_v9 }
 0x31f   :  { %2678 = vmatpush3.bf16.msra.mxu1 %v2920_v10  ;;  %2681 = vmatprep.mubr.msk.bf16.mxu1 %vm3150_vm0, %v3149_v0 }
 0x320   :  { %2679 = vmatprep.subr.bf16.mxu1 %v3149_v0  ;;  %2689 = vmatprep.mubr.msk.bf16.mxu0 %vm3150_vm0, %v3149_v0 }
 0x321   :  { %2686 = vmatpush3.bf16.msra.mxu0 %v2922_v22 }
 0x322   :  { %2687 = vmatprep.subr.bf16.mxu0 %v3149_v0 }
 0x323   :  { %2680 = vmatpush3.bf16.msra.mxu1 %v2921_v11 }
 0x324   :  { %2693 = vmatprep.subr.bf16.mxu1 %v3149_v0 }
 0x325   :  { %2688 = vmatpush3.bf16.msra.mxu0 %v2923_v23 }
 0x326   :  { %2699 = vmatprep.subr.bf16.mxu0 %v3149_v0 }
 0x3f1   :  { %v414_v12 = vpop.f32.mrb[0].mxu0  ;;  %v3351_v13 = vpop.f32.mrb[12].mxu1 }
 0x3f2   :  { %v2675_v15 = vpop.f32.mrb[1].mxu0  ;;  %v2669_v16 = vpop.f32.mrb[13].mxu1 }
 0x3f3   :  { %v417_v17 = vpop.f32.mrb[2].mxu0  ;;  %v372_v18 = vpop.f32.mrb[14].mxu1 }
 0x3f4   :  { %v435_v19 = vpack.c.bf16 %v417_v17, %v414_v12  ;;  %v2676_v20 = vpop.f32.mrb[3].mxu0  ;;  %v2670_v21 = vpop.f32.mrb[15].mxu1  ;;  %v3375_v18 = vld [vmem:[#allocation9 + $0x6] ss:$0 sm:$0xff] }
 0x3f5   :  { %v3377_v21 = vld [vmem:[#allocation9 + $0x7] ss:$0 sm:$0xff] }
 0x3f6   :  { %2682 = vmatmul.mubr.msk.bf16.vlgmr.msra.gmra.mrb[16].mxu1 %vm241_vm4, %v435_v19 }
 0x3f7   :  { %2695 = vmatprep.mubr.msk.bf16.mxu1 %vm3150_vm0, %v3149_v0 }
 0x4c9   :  { %v489_v26 = vpop.f32.mrb[16].mxu1 }
 0x4ca   :  { %v490_v27 = vadd.f32 %v3358_v25, %v489_v26  ;;  %v2683_v28 = vpop.f32.mrb[17].mxu1 }
 0x4cb   :  { %v492_v29 = vpop.f32.mrb[18].mxu1 }
 0x4cc   :  { %v493_v30 = vadd.f32 %v3358_v25, %v492_v29  ;;  %v2684_v31 = vpop.f32.mrb[19].mxu1  ;;  %v496_v32 = vmax.f32 %v490_v27, 0.0  ;;  %v2924_v29 = vld [vmem:[#allocation11] sm:$0xff]  }
 0x4cd   :  { %v375_v31 = vpack.c.bf16 %v3351_v13, %v3351_v13 }
 0x4ce   :  { %v497_v33 = vmax.f32 %v493_v30, 0.0  ;;  %v2925_v30 = vld [vmem:[#allocation11 + $0x8] sm:$0xff]  }
 0x4d0   :  { %v498_v34 = vpack.c.bf16 %v497_v33, %v496_v32 }
 0x4d2   :  { %2690 = vmatmul.mubr.msk.bf16.vlgmr.msra.gmra.mrb[4].mxu0 %vm241_vm4, %v498_v34 }
 0x4d3   :  { %2703 = vmatprep.mubr.msk.bf16.mxu0 %vm3150_vm0, %v3149_v0  ;;  %2700 = vmatpush3.bf16.msra.mxu0 %v2926_v35 }
 0x4d4   :  { %2701 = vmatprep.subr.bf16.mxu0 %v3149_v0 }
 0x4d7   :  { %2702 = vmatpush3.bf16.msra.mxu0 %v2927_v36 }
 0x4d8   :  { %2715 = vmatprep.subr.bf16.mxu0 %v3149_v0 }
 0x5a5   :  { %v552_v38 = vpop.f32.mrb[4].mxu0 }
 0x5a6   :  { %v553_v39 = vadd.f32 %v3367_v37, %v552_v38  ;;  %v2691_v40 = vpop.f32.mrb[5].mxu0 }
 0x5a7   :  { %v555_v41 = vpop.f32.mrb[6].mxu0 }
 0x5a8   :  { %v559_v42 = vmax.f32 %v553_v39, 0.0  ;;  %v556_v43 = vadd.f32 %v3367_v37, %v555_v41  ;;  %v2692_v44 = vpop.f32.mrb[7].mxu0  ;;  %v2928_v41 = vld [vmem:[#allocation8 + $0x30] sm:$0xff]  }
 0x5aa   :  { %v571_v45 = vmul.f32 %v559_v42, %v559_v42  ;;  %v560_v46 = vmax.f32 %v556_v43, 0.0  ;;  %v561_v47 = vsel %vm241_vm4, %v559_v42, 0.0 }
 0x5ac   :  { %v562_v48 = vsel %vm241_vm4, %v560_v46, 0.0  ;;  %v572_v49 = vmul.f32 %v560_v46, %v560_v46  ;;  %v573_v51 = vsel %vm241_vm4, %v571_v45, 0.0 }
 0x5ad   :  { %v563_v50 = vadd.f32 %v562_v48, %v561_v47 }
 0x5ae   :  { %v574_v52 = vsel %vm241_vm4, %v572_v49, 0.0 }
 0x5af   :  { %v564_v53 = vrot.slane %v563_v50, 4  ;;  %v575_v54 = vadd.f32 %v574_v52, %v573_v51 }
 0x5b1   :  { %v565_v55 = vadd.f32 %v564_v53, %v563_v50  ;;  %v576_v56 = vrot.slane %v575_v54, 4  ;;  %v2930_v53 = vld [vmem:[#allocation8 + $0x40] sm:$0xff]  }
 0x5b3   :  { %v566_v57 = vrot.slane %v565_v55, 2  ;;  %v577_v58 = vadd.f32 %v576_v56, %v575_v54  ;;  %v2931_v54 = vld [vmem:[#allocation8 + $0x48] sm:$0xff]  }
 0x5b5   :  { %v567_v59 = vadd.f32 %v566_v57, %v565_v55  ;;  %v578_v60 = vrot.slane %v577_v58, 2  ;;  %v3412_v55 = vld [vmem:[#allocation9 + $0x8] ss:$0 sm:$0xff] }
 0x5b7   :  { %v568_v61 = vrot.slane %v567_v59, 1  ;;  %v579_v63 = vadd.f32 %v578_v60, %v577_v58 }
 0x5b9   :  { %v569_v1 = vadd.f32 %v568_v61, %v567_v59  ;;  %v580_v3 = vrot.slane %v579_v63, 1 }
 0x5bb   :  { %v570_v5 = vmul.f32 0.0625, %v569_v1  ;;  %v581_v6 = vadd.f32 %v580_v3, %v579_v63 }
 0x5bd   :  { %v582_v7 = vmul.f32 0.0625, %v581_v6  ;;  %v583_v8 = vmul.f32 %v570_v5, %v570_v5  ;;  %v586_v10 = vsub.f32 %v559_v42, %v570_v5  ;;  %v587_v11 = vsub.f32 %v560_v46, %v570_v5  ;;  %v2929_v42 = vld [vmem:[#allocation8 + $0x38] sm:$0xff]   ;;  %v2932_v5 = vld [vmem:[#allocation11 + $0x20] sm:$0xff]  }
 0x5be   :  { %v3420_v6 = vld [vmem:[#allocation9 + $0x9] ss:$0 sm:$0xff] }
 0x5bf   :  { %v584_v12 = vsub.f32 %v582_v7, %v583_v8 }
 0x5c1   :  { %v585_v15 = vmax.f32 %v584_v12, 0.0 }
 0x5c3   :  { %v588_v16 = vadd.f32 1e-05, %v585_v15 }
 0x5c5   :  { %2968 = vrsqrt.f32 %v588_v16 }
 0x5cf   :  { %v2969_v17 = vpop.eup %2968 }
 0x5d0   :  { %v591_v19 = vmul.f32 %v2969_v17, %v587_v11  ;;  %v590_v20 = vmul.f32 %v2969_v17, %v586_v10 }
 0x5d2   :  { %v597_v22 = vmul.f32 %v3375_v18, %v591_v19  ;;  %v596_v23 = vmul.f32 %v3375_v18, %v590_v20 }
 0x5d4   :  { %v602_v26 = vadd.f32 %v3377_v21, %v596_v23  ;;  %v603_v27 = vadd.f32 %v3377_v21, %v597_v22 }
 0x5d6   :  { %v604_v28 = vpack.c.bf16 %v603_v27, %v602_v26 }
 0x5d8   :  { %2694 = vmatpush3.bf16.msra.mxu1 %v604_v28 }
 0x5d9   :  { %2707 = vmatprep.subr.bf16.mxu1 %v3149_v0 }
 0x5db   :  { %2696 = vmatmul.mubr.msk.bf16.vlgmr.msra.gmra.mrb[20].mxu1 %vm114_vm1, %v3337_v9 }
 0x5dc   :  { %2708 = vmatpush3.bf16.msra.mxu1 %v2924_v29  ;;  %2711 = vmatprep.mubr.msk.bf16.mxu1 %vm3150_vm0, %v3149_v0 }
 0x5dd   :  { %2709 = vmatprep.subr.bf16.mxu1 %v3149_v0 }
 0x5e0   :  { %2710 = vmatpush3.bf16.msra.mxu1 %v2925_v30 }
 0x5e1   :  { %2721 = vmatprep.subr.bf16.mxu1 %v3149_v0 }
 0x5e3   :  { %2712 = vmatmul.mubr.msk.bf16.vlgmr.msra.gmra.mrb[24].mxu1 %vm241_vm4, %v375_v31 }
 0x5e4   :  { %2725 = vmatprep.mubr.msk.bf16.mxu1 %vm3150_vm0, %v3149_v0  ;;  %2722 = vmatpush3.bf16.msra.mxu1 %v2928_v41 }
 0x5e5   :  { %2723 = vmatprep.subr.bf16.mxu1 %v3149_v0 }
 0x5e8   :  { %2724 = vmatpush3.bf16.msra.mxu1 %v2929_v42 }
 0x5e9   :  { %2737 = vmatprep.subr.bf16.mxu1 %v3149_v0 }
 0x6ae   :  { %v639_v32 = vpop.f32.mrb[20].mxu1 }
 0x6af   :  { %v645_v33 = vpack.c.bf16 %v639_v32, %v639_v32  ;;  %v2697_v34 = vpop.f32.mrb[21].mxu1 }
 0x6b0   :  { %v642_v35 = vpop.f32.mrb[22].mxu1 }
 0x6b1   :  { %v2698_v36 = vpop.f32.mrb[23].mxu1  ;;  %2704 = vmatmul.mubr.msk.bf16.vlgmr.msra.gmra.mrb[8].mxu0 %vm241_vm4, %v645_v33 }
 0x6b2   :  { %2716 = vmatpush3.bf16.msra.mxu0 %v604_v28  ;;  %2717 = vmatprep.mubr.msk.bf16.mxu0 %vm3150_vm0, %v3149_v0 }
 0x6b3   :  { %2729 = vmatprep.subr.bf16.mxu0 %v3149_v0 }
 0x6b6   :  { %v755_v13 = vpop.f32.mrb[24].mxu1 }
 0x6b7   :  { %v2713_v38 = vpop.f32.mrb[25].mxu1 }
 0x6b8   :  { %v758_v39 = vpop.f32.mrb[26].mxu1 }
 0x6b9   :  { %v2714_v40 = vpop.f32.mrb[27].mxu1  ;;  %2718 = vmatmul.mubr.msk.bf16.vlgmr.msra.gmra.mrb[12].mxu0 %vm114_vm1, %v3300_v4 }
 0x6ba   :  { %2733 = vmatprep.mubr.msk.bf16.mxu0 %vm3150_vm0, %v3149_v0  ;;  %2730 = vmatpush3.bf16.msra.mxu0 %v2930_v53 }
 0x6bb   :  { %2731 = vmatprep.subr.bf16.mxu0 %v3149_v0 }
 0x6be   :  { %2732 = vmatpush3.bf16.msra.mxu0 %v2931_v54 }
 0x6bf   :  { %2743 = vmatprep.subr.bf16.mxu0 %v3149_v0 }
 0x784   :  { %v700_v43 = vpop.f32.mrb[8].mxu0 }
 0x785   :  { %v3405_v44 = vadd.f32 %v755_v13, %v700_v43  ;;  %v2705_v45 = vpop.f32.mrb[9].mxu0 }
 0x786   :  { %v703_v46 = vpop.f32.mrb[10].mxu0 }
 0x787   :  { %v2706_v47 = vpop.f32.mrb[11].mxu0 }
 0x78c   :  { %v795_v48 = vpop.f32.mrb[12].mxu0 }
 0x78d   :  { %v2719_v49 = vpop.f32.mrb[13].mxu0 }
 0x78e   :  { %v798_v50 = vpop.f32.mrb[14].mxu0 }
 0x78f   :  { %v816_v51 = vpack.c.bf16 %v798_v50, %v795_v48  ;;  %v2720_v52 = vpop.f32.mrb[15].mxu0 }
 0x790   :  { %v3428_v52 = vld [vmem:[#allocation9 + $0xa] ss:$0 sm:$0xff] }
 0x791   :  { %2726 = vmatmul.mubr.msk.bf16.vlgmr.msra.gmra.mrb[28].mxu1 %vm241_vm4, %v816_v51 }
 0x792   :  { %2739 = vmatprep.mubr.msk.bf16.mxu1 %vm3150_vm0, %v3149_v0 }
 0x864   :  { %v870_v56 = vpop.f32.mrb[28].mxu1 }
 0x865   :  { %v871_v57 = vadd.f32 %v3412_v55, %v870_v56  ;;  %v2727_v58 = vpop.f32.mrb[29].mxu1  ;;  %v3430_v56 = vld [vmem:[#allocation9 + $0xb] ss:$0 sm:$0xff] }
 0x866   :  { %v873_v59 = vpop.f32.mrb[30].mxu1 }
 0x867   :  { %v874_v60 = vadd.f32 %v3412_v55, %v873_v59  ;;  %v2728_v61 = vpop.f32.mrb[31].mxu1  ;;  %v877_v63 = vmax.f32 %v871_v57, 0.0 }
 0x869   :  { %v878_v1 = vmax.f32 %v874_v60, 0.0 }
 0x86b   :  { %v879_v3 = vpack.c.bf16 %v878_v1, %v877_v63  ;;  %v2933_v63 = vld [vmem:[#allocation11 + $0x28] sm:$0xff]   ;;  %v2934_v1 = vld [vmem:[%s3699_s7] sm:$0xff]  }
 0x86d   :  { %2734 = vmatmul.mubr.msk.bf16.vlgmr.msra.gmra.mrb[16].mxu0 %vm241_vm4, %v879_v3  ;;  %v2935_v3 = vld [vmem:[%s3699_s7 + $0x8] sm:$0xff]  }
 0x86e   :  { %2747 = vmatprep.mubr.msk.bf16.mxu0 %vm3150_vm0, %v3149_v0  ;;  %2744 = vmatpush3.bf16.msra.mxu0 %v2932_v5  ;;  %v2936_v5 = vld [vmem:[%s3699_s7 + $0x10] sm:$0xff]  }
 0x86f   :  { %2745 = vmatprep.subr.bf16.mxu0 %v3149_v0 }
 0x872   :  { %2746 = vmatpush3.bf16.msra.mxu0 %v2933_v63 }
 0x873   :  { %2771 = vmatprep.subr.bf16.mxu0 %v3149_v0 }
 0x940   :  { %v933_v7 = vpop.f32.mrb[16].mxu0 }
 0x941   :  { %v934_v8 = vadd.f32 %v3420_v6, %v933_v7  ;;  %v2735_v10 = vpop.f32.mrb[17].mxu0  ;;  %v2937_v7 = vld [vmem:[%s3699_s7 + $0x18] sm:$0xff]  }
 0x942   :  { %v936_v11 = vpop.f32.mrb[18].mxu0  ;;  %v2939_v10 = vld [vmem:[%s3699_s7 + $0x28] sm:$0xff]  }
 0x943   :  { %v940_v12 = vmax.f32 %v934_v8, 0.0  ;;  %v937_v15 = vadd.f32 %v3420_v6, %v936_v11  ;;  %v2736_v16 = vpop.f32.mrb[19].mxu0  ;;  %v2938_v8 = vld [vmem:[%s3699_s7 + $0x20] sm:$0xff]   ;;  %v2493_v11 = vld [vmem:[%s3692_s0 + $0x10] sm:$0xff] }
 0x945   :  { %v952_v17 = vmul.f32 %v940_v12, %v940_v12  ;;  %v941_v19 = vmax.f32 %v937_v15, 0.0  ;;  %v942_v20 = vsel %vm241_vm4, %v940_v12, 0.0 }
 0x947   :  { %v943_v22 = vsel %vm241_vm4, %v941_v19, 0.0  ;;  %v953_v23 = vmul.f32 %v941_v19, %v941_v19  ;;  %v954_v27 = vsel %vm241_vm4, %v952_v17, 0.0 }
 0x948   :  { %v944_v26 = vadd.f32 %v943_v22, %v942_v20 }
 0x949   :  { %v955_v28 = vsel %vm241_vm4, %v953_v23, 0.0  ;;  %v2940_v23 = vld [vmem:[%s3699_s7 + $0x30] sm:$0xff]  }
 0x94a   :  { %v945_v29 = vrot.slane %v944_v26, 4  ;;  %v956_v30 = vadd.f32 %v955_v28, %v954_v27  ;;  %v1249_v27 = vld [vmem:[#allocation6] sm:$0xf]  ;;  %v3493_v28 = vld [vmem:[%s3700_s8] ss:$0 sm:$0xff] }
 0x94c   :  { %v946_v31 = vadd.f32 %v945_v29, %v944_v26  ;;  %v957_v32 = vrot.slane %v956_v30, 4  ;;  %v2941_v26 = vld [vmem:[%s3699_s7 + $0x38] sm:$0xff]  }
 0x94e   :  { %v947_v33 = vrot.slane %v946_v31, 2  ;;  %v958_v34 = vadd.f32 %v957_v32, %v956_v30 }
 0x950   :  { %v948_v35 = vadd.f32 %v947_v33, %v946_v31  ;;  %v959_v36 = vrot.slane %v958_v34, 2 }
 0x952   :  { %v949_v13 = vrot.slane %v948_v35, 1  ;;  %v960_v38 = vadd.f32 %v959_v36, %v958_v34 }
 0x954   :  { %v950_v39 = vadd.f32 %v949_v13, %v948_v35  ;;  %v961_v40 = vrot.slane %v960_v38, 1 }
 0x956   :  { %v951_v41 = vmul.f32 0.0625, %v950_v39  ;;  %v962_v42 = vadd.f32 %v961_v40, %v960_v38 }
 0x958   :  { %v963_v43 = vmul.f32 0.0625, %v962_v42  ;;  %v964_v45 = vmul.f32 %v951_v41, %v951_v41  ;;  %v967_v46 = vsub.f32 %v940_v12, %v951_v41  ;;  %v968_v47 = vsub.f32 %v941_v19, %v951_v41  ;;  %v2494_v12 = vld [vmem:[%s3692_s0 + $0x18] sm:$0xff]  ;;  %v2943_v42 = vld [vmem:[#allocation8 + $0x8] sm:$0xff]  }
 0x959   :  { %v1207_v16 = vpack.c.bf16 %v2494_v12, %v2493_v11 }
 0x95a   :  { %v965_v48 = vsub.f32 %v963_v43, %v964_v45  ;;  %v3507_v43 = vld [vmem:[%s3700_s8 + $0x1] ss:$0 sm:$0xff] }
 0x95c   :  { %v966_v49 = vmax.f32 %v965_v48, 0.0 }
 0x95e   :  { %v969_v50 = vadd.f32 1e-05, %v966_v49 }
 0x960   :  { %2970 = vrsqrt.f32 %v969_v50 }
 0x96a   :  { %v2971_v51 = vpop.eup %2970 }
 0x96b   :  { %v972_v53 = vmul.f32 %v2971_v51, %v968_v47  ;;  %v971_v54 = vmul.f32 %v2971_v51, %v967_v46 }
 0x96d   :  { %v978_v57 = vmul.f32 %v3428_v52, %v972_v53  ;;  %v977_v58 = vmul.f32 %v3428_v52, %v971_v54 }
 0x96f   :  { %v983_v59 = vadd.f32 %v3430_v56, %v977_v58  ;;  %v984_v60 = vadd.f32 %v3430_v56, %v978_v57 }
 0x971   :  { %v985_v61 = vpack.c.bf16 %v984_v60, %v983_v59 }
 0x973   :  { %2738 = vmatpush3.bf16.msra.mxu1 %v985_v61 }
 0x974   :  { %2751 = vmatprep.subr.bf16.mxu1 %v3149_v0 }
 0x976   :  { %2740 = vmatmul.mubr.msk.bf16.vlgmr.msra.gmra.mrb[32].mxu1 %vm114_vm1, %v3337_v9 }
 0x977   :  { %2767 = vmatprep.mubr.msk.bf16.mxu1 %vm3150_vm0, %v3149_v0  ;;  %2752 = vmatpush3.bf16.msra.mxu1 %v2934_v1 }
 0x978   :  { %2753 = vmatprep.subr.bf16.mxu1 %v3149_v0 }
 0x97b   :  { %2754 = vmatpush3.bf16.msra.mxu1 %v2935_v3 }
 0x97c   :  { %2755 = vmatprep.subr.bf16.mxu1 %v3149_v0 }
 0x97f   :  { %2756 = vmatpush3.bf16.msra.mxu1 %v2936_v5 }
 0x980   :  { %2757 = vmatprep.subr.bf16.mxu1 %v3149_v0 }
 0x983   :  { %2758 = vmatpush3.bf16.msra.mxu1 %v2937_v7 }
 0x984   :  { %2759 = vmatprep.subr.bf16.mxu1 %v3149_v0 }
 0x987   :  { %2760 = vmatpush3.bf16.msra.mxu1 %v2938_v8 }
 0x988   :  { %2761 = vmatprep.subr.bf16.mxu1 %v3149_v0 }
 0x98b   :  { %2762 = vmatpush3.bf16.msra.mxu1 %v2939_v10 }
 0x98c   :  { %2763 = vmatprep.subr.bf16.mxu1 %v3149_v0 }
 0x98f   :  { %2764 = vmatpush3.bf16.msra.mxu1 %v2940_v23 }
 0x990   :  { %2765 = vmatprep.subr.bf16.mxu1 %v3149_v0 }
 0x993   :  { %2766 = vmatpush3.bf16.msra.mxu1 %v2941_v26 }
 0x994   :  { %2797 = vmatprep.subr.bf16.mxu1 %v3149_v0 }
 0xa49   :  { %v1020_v15 = vpop.f32.mrb[32].mxu1 }
 0xa4a   :  { %v1026_v17 = vpack.c.bf16 %v1020_v15, %v1020_v15  ;;  %v2741_v19 = vpop.f32.mrb[33].mxu1 }
 0xa4b   :  { %v1023_v20 = vpop.f32.mrb[34].mxu1 }
 0xa4c   :  { %v2742_v22 = vpop.f32.mrb[35].mxu1  ;;  %2748 = vmatmul.mubr.msk.bf16.vlgmr.msra.gmra.mrb[20].mxu0 %vm241_vm4, %v1026_v17 }
 0xa4d   :  { %2772 = vmatpush3.bf16.msra.mxu0 %v1207_v16  ;;  %2773 = vmatprep.mubr.msk.bf16.mxu0 %vm3150_vm0, %v3149_v0 }
 0xa4e   :  { %2777 = vmatprep.subr.bf16.mxu0 %v3149_v0 }
 0xa54   :  { %2774 = vmatmul.mubr.msk.bf16.vlgmr.msra.gmra.mrb[24].mxu0 %vm114_vm1, %v3300_v4  ;;  %v1267_v4 = vsel %vm177_vm2, %v1249_v27, 0 }
 0xa55   :  { %2779 = vmatprep.mubr.msk.bf16.mxu0 %vm3150_vm0, %v3149_v0  ;;  %2778 = vmatpush3.bf16.msra.mxu0 %v1267_v4 }
 0xa56   :  { %2783 = vmatprep.subr.bf16.mxu0 %v3149_v0 }
 0xb1f   :  { %v1081_v29 = vpop.f32.mrb[20].mxu0 }
 0xb20   :  { %v1087_v30 = vadd.f32 %v1081_v29, %v3405_v44  ;;  %v2749_v31 = vpop.f32.mrb[21].mxu0  ;;  %v2942_v44 = vld [vmem:[#allocation8] sm:$0xff]  }
 0xb21   :  { %v1084_v32 = vpop.f32.mrb[22].mxu0 }
 0xb22   :  { %v1092_v33 = vadd.f32 %v3493_v28, %v1087_v30  ;;  %v2750_v34 = vpop.f32.mrb[23].mxu0 }
 0xb24   :  { %v1093_v35 = vmax.f32 %v1092_v33, 0.0 }
 0xb26   :  { %v1094_v36 = vpack.c.bf16 %v1093_v35, %v1093_v35 }
 0xb27   :  { %v1242_v13 = vpop.f32.mrb[24].mxu0 }
 0xb28   :  { %2768 = vmatmul.mubr.bf16.vlgmr.msra.gmra.mrb[36].mxu1 %v1094_v36  ;;  %v2775_v38 = vpop.f32.mrb[25].mxu0 }
 0xb29   :  { %v1245_v39 = vpop.f32.mrb[26].mxu0  ;;  %2799 = vmatprep.mubr.msk.bf16.mxu1 %vm3150_vm0, %v3149_v0 }
 0xb2a   :  { %v1258_v40 = vpack.c.bf16 %v1245_v39, %v1242_v13  ;;  %v2776_v41 = vpop.f32.mrb[27].mxu0 }
 0xb2c   :  { %2780 = vmatmul.mubr.msk.bf16.vlgmr.msra.gmra.mrb[28].mxu0 %vm173_vm3, %v1258_v40 }
 0xb2d   :  { %2787 = vmatprep.mubr.msk.bf16.mxu0 %vm3150_vm0, %v3149_v0  ;;  %2784 = vmatpush3.bf16.msra.mxu0 %v2942_v44 }
 0xb2e   :  { %2785 = vmatprep.subr.bf16.mxu0 %v3149_v0 }
 0xb31   :  { %2786 = vmatpush3.bf16.msra.mxu0 %v2943_v42 }
 0xb32   :  { %2791 = vmatprep.subr.bf16.mxu0 %v3149_v0 }
 0xbfb   :  { %v1197_v45 = vpop.f32.mrb[36].mxu1 }
 0xbfc   :  { %v3510_v46 = vadd.f32 %v3507_v43, %v1197_v45  ;;  %v2769_v47 = vpop.f32.mrb[37].mxu1 }
 0xbfd   :  { %v1200_v48 = vpop.f32.mrb[38].mxu1 }
 0xbfe   :  { %1203 = vst [vmem:[#allocation12] sm:$0xff] %v3510_v46  ;;  %v2770_v49 = vpop.f32.mrb[39].mxu1 }
 0xbff   :  { %v1303_v50 = vpop.f32.mrb[28].mxu0 }
 0xc00   :  { %v1304_v51 = vadd.f32 %v3314_v14, %v1303_v50  ;;  %v2781_v53 = vpop.f32.mrb[29].mxu0 }
 0xc01   :  { %v1306_v54 = vpop.f32.mrb[30].mxu0 }
 0xc02   :  { %v1307_v57 = vadd.f32 %v3314_v14, %v1306_v54  ;;  %v2782_v58 = vpop.f32.mrb[31].mxu0  ;;  %v1310_v59 = vmax.f32 %v1304_v51, 0.0 }
 0xc03   :  { %v3533_v58 = vld [vmem:[%s3693_s1] sm:$0xff]  }
 0xc04   :  { %v1311_v60 = vmax.f32 %v1307_v57, 0.0  ;;  %v2944_v57 = vld [vmem:[#allocation8 + $0x10] sm:$0xff]  }
 0xc06   :  { %v1312_v61 = vpack.c.bf16 %v1311_v60, %v1310_v59 }
 0xc08   :  { %2788 = vmatmul.mubr.msk.bf16.vlgmr.msra.gmra.mrb[32].mxu0 %vm241_vm4, %v1312_v61 }
 0xc09   :  { %2793 = vmatprep.mubr.msk.bf16.mxu0 %vm3150_vm0, %v3149_v0 }
 0xcdb   :  { %v1366_v63 = vpop.f32.mrb[32].mxu0 }
 0xcdc   :  { %v1367_v1 = vadd.f32 %v3321_v24, %v1366_v63  ;;  %v2789_v3 = vpop.f32.mrb[33].mxu0 }
 0xcdd   :  { %v1369_v5 = vpop.f32.mrb[34].mxu0 }
 0xcde   :  { %v1373_v7 = vmax.f32 %v1367_v1, 0.0  ;;  %v1370_v8 = vadd.f32 %v3321_v24, %v1369_v5  ;;  %v2790_v10 = vpop.f32.mrb[35].mxu0 }
 0xcdf   :  { %v2947_v10 = vld [vmem:[#allocation8 + $0x28] sm:$0xff]  }
 0xce0   :  { %v1385_v11 = vmul.f32 %v1373_v7, %v1373_v7  ;;  %v1374_v14 = vmax.f32 %v1370_v8, 0.0  ;;  %v1375_v12 = vsel %vm241_vm4, %v1373_v7, 0.0  ;;  %v2946_v8 = vld [vmem:[#allocation8 + $0x20] sm:$0xff]  }
 0xce2   :  { %v1376_v15 = vsel %vm241_vm4, %v1374_v14, 0.0  ;;  %v1386_v16 = vmul.f32 %v1374_v14, %v1374_v14  ;;  %v1387_v19 = vsel %vm241_vm4, %v1385_v11, 0.0 }
 0xce3   :  { %v1377_v17 = vadd.f32 %v1376_v15, %v1375_v12 }
 0xce4   :  { %v1388_v20 = vsel %vm241_vm4, %v1386_v16, 0.0 }
 0xce5   :  { %v1378_v22 = vrot.slane %v1377_v17, 4  ;;  %v1389_v23 = vadd.f32 %v1388_v20, %v1387_v19 }
 0xce7   :  { %v1379_v26 = vadd.f32 %v1378_v22, %v1377_v17  ;;  %v1390_v27 = vrot.slane %v1389_v23, 4 }
 0xce9   :  { %v1380_v4 = vrot.slane %v1379_v26, 2  ;;  %v1391_v29 = vadd.f32 %v1390_v27, %v1389_v23  ;;  %v2950_v23 = vld [vmem:[#allocation11 + $0x10] sm:$0xff]  }
 0xceb   :  { %v1381_v24 = vadd.f32 %v1380_v4, %v1379_v26  ;;  %v1392_v30 = vrot.slane %v1391_v29, 2  ;;  %v2951_v26 = vld [vmem:[#allocation11 + $0x18] sm:$0xff]  }
 0xced   :  { %v1382_v31 = vrot.slane %v1381_v24, 1  ;;  %v1393_v32 = vadd.f32 %v1392_v30, %v1391_v29 }
 0xcef   :  { %v1383_v33 = vadd.f32 %v1382_v31, %v1381_v24  ;;  %v1394_v34 = vrot.slane %v1393_v32, 1 }
 0xcf1   :  { %v1384_v35 = vmul.f32 0.0625, %v1383_v33  ;;  %v1395_v36 = vadd.f32 %v1394_v34, %v1393_v32 }
 0xcf3   :  { %v1396_v13 = vmul.f32 0.0625, %v1395_v36  ;;  %v1397_v38 = vmul.f32 %v1384_v35, %v1384_v35  ;;  %v1400_v39 = vsub.f32 %v1373_v7, %v1384_v35  ;;  %v1401_v40 = vsub.f32 %v1374_v14, %v1384_v35 }
 0xcf5   :  { %v1398_v41 = vsub.f32 %v1396_v13, %v1397_v38 }
 0xcf7   :  { %v1399_v44 = vmax.f32 %v1398_v41, 0.0 }
 0xcf9   :  { %v1402_v42 = vadd.f32 1e-05, %v1399_v44 }
 0xcfb   :  { %2972 = vrsqrt.f32 %v1402_v42 }
 0xd05   :  { %v2973_v45 = vpop.eup %2972 }
 0xd06   :  { %v1405_v47 = vmul.f32 %v2973_v45, %v1401_v40  ;;  %v1404_v48 = vmul.f32 %v2973_v45, %v1400_v39 }
 0xd08   :  { %v1411_v49 = vmul.f32 %v3329_v62, %v1405_v47  ;;  %v1410_v50 = vmul.f32 %v3329_v62, %v1404_v48  ;;  %v2945_v62 = vld [vmem:[#allocation8 + $0x18] sm:$0xff]  }
 0xd0a   :  { %v1416_v51 = vadd.f32 %v3331_v2, %v1410_v50  ;;  %v1417_v53 = vadd.f32 %v3331_v2, %v1411_v49 }
 0xd0c   :  { %v1418_v54 = vpack.c.bf16 %v1417_v53, %v1416_v51 }
 0xd0e   :  { %2792 = vmatpush3.bf16.msra.mxu0 %v1418_v54  ;;  %2798 = vmatpush3.bf16.msra.mxu1 %v1418_v54 }
 0xd0f   :  { %2803 = vmatprep.subr.bf16.mxu0 %v3149_v0  ;;  %2811 = vmatprep.subr.bf16.mxu1 %v3149_v0 }
 0xd11   :  { %2800 = vmatmul.mubr.msk.bf16.vlgmr.msra.gmra.mrb[40].mxu1 %vm114_vm1, %v3533_v58  ;;  %2794 = vmatmul.mubr.msk.bf16.vlgmr.msra.gmra.mrb[36].mxu0 %vm114_vm1, %v3337_v9 }
 0xd12   :  { %2804 = vmatpush3.bf16.msra.mxu0 %v2944_v57  ;;  %2807 = vmatprep.mubr.msk.bf16.mxu0 %vm3150_vm0, %v3149_v0 }
 0xd13   :  { %2805 = vmatprep.subr.bf16.mxu0 %v3149_v0  ;;  %2815 = vmatprep.mubr.msk.bf16.mxu1 %vm3150_vm0, %v3149_v0 }
 0xd14   :  { %2812 = vmatpush3.bf16.msra.mxu1 %v2946_v8 }
 0xd15   :  { %2813 = vmatprep.subr.bf16.mxu1 %v3149_v0 }
 0xd16   :  { %2806 = vmatpush3.bf16.msra.mxu0 %v2945_v62 }
 0xd17   :  { %2819 = vmatprep.subr.bf16.mxu0 %v3149_v0 }
 0xd18   :  { %2814 = vmatpush3.bf16.msra.mxu1 %v2947_v10 }
 0xd19   :  { %2825 = vmatprep.subr.bf16.mxu1 %v3149_v0 }
 0xde4   :  { %v1498_v2 = vpop.f32.mrb[40].mxu1  ;;  %v3545_v59 = vpop.f32.mrb[36].mxu0 }
 0xde5   :  { %v2801_v60 = vpop.f32.mrb[41].mxu1  ;;  %v2795_v61 = vpop.f32.mrb[37].mxu0 }
 0xde6   :  { %v1501_v63 = vpop.f32.mrb[42].mxu1  ;;  %v1456_v1 = vpop.f32.mrb[38].mxu0 }
 0xde7   :  { %v1517_v3 = vpack.c.bf16 %v1501_v63, %v1498_v2  ;;  %v2802_v5 = vpop.f32.mrb[43].mxu1  ;;  %v2796_v7 = vpop.f32.mrb[39].mxu0 }
 0xde9   :  { %2808 = vmatmul.mubr.msk.bf16.vlgmr.msra.gmra.mrb[40].mxu0 %vm241_vm4, %v1517_v3 }
 0xdea   :  { %2821 = vmatprep.mubr.msk.bf16.mxu0 %vm3150_vm0, %v3149_v0 }
 0xebc   :  { %v1571_v11 = vpop.f32.mrb[40].mxu0 }
 0xebd   :  { %v1572_v14 = vadd.f32 %v3358_v25, %v1571_v11  ;;  %v2809_v12 = vpop.f32.mrb[41].mxu0 }
 0xebe   :  { %v1574_v15 = vpop.f32.mrb[42].mxu0 }
 0xebf   :  { %v1575_v16 = vadd.f32 %v3358_v25, %v1574_v15  ;;  %v2810_v17 = vpop.f32.mrb[43].mxu0  ;;  %v1578_v19 = vmax.f32 %v1572_v14, 0.0 }
 0xec0   :  { %v2949_v17 = vld [vmem:[#allocation11 + $0x8] sm:$0xff]  }
 0xec1   :  { %v1579_v20 = vmax.f32 %v1575_v16, 0.0  ;;  %v2948_v16 = vld [vmem:[#allocation11] sm:$0xff]  }
 0xec3   :  { %v1580_v22 = vpack.c.bf16 %v1579_v20, %v1578_v19 }
 0xec5   :  { %2816 = vmatmul.mubr.msk.bf16.vlgmr.msra.gmra.mrb[44].mxu1 %vm241_vm4, %v1580_v22 }
 0xec6   :  { %2829 = vmatprep.mubr.msk.bf16.mxu1 %vm3150_vm0, %v3149_v0  ;;  %2826 = vmatpush3.bf16.msra.mxu1 %v2950_v23 }
 0xec7   :  { %2827 = vmatprep.subr.bf16.mxu1 %v3149_v0 }
 0xeca   :  { %2828 = vmatpush3.bf16.msra.mxu1 %v2951_v26 }
 0xecb   :  { %2841 = vmatprep.subr.bf16.mxu1 %v3149_v0 }
 0xf98   :  { %v1634_v27 = vpop.f32.mrb[44].mxu1 }
 0xf99   :  { %v1635_v25 = vadd.f32 %v3367_v37, %v1634_v27  ;;  %v2817_v4 = vpop.f32.mrb[45].mxu1 }
 0xf9a   :  { %v1637_v29 = vpop.f32.mrb[46].mxu1  ;;  %v2953_v4 = vld [vmem:[#allocation8 + $0x38] sm:$0xff]  }
 0xf9b   :  { %v1641_v24 = vmax.f32 %v1635_v25, 0.0  ;;  %v1638_v30 = vadd.f32 %v3367_v37, %v1637_v29  ;;  %v2818_v31 = vpop.f32.mrb[47].mxu1  ;;  %v2952_v25 = vld [vmem:[#allocation8 + $0x30] sm:$0xff]  }
 0xf9d   :  { %v1653_v32 = vmul.f32 %v1641_v24, %v1641_v24  ;;  %v1642_v33 = vmax.f32 %v1638_v30, 0.0  ;;  %v1643_v34 = vsel %vm241_vm4, %v1641_v24, 0.0 }
 0xf9f   :  { %v1644_v35 = vsel %vm241_vm4, %v1642_v33, 0.0  ;;  %v1654_v36 = vmul.f32 %v1642_v33, %v1642_v33  ;;  %v1655_v38 = vsel %vm241_vm4, %v1653_v32, 0.0 }
 0xfa0   :  { %v1645_v13 = vadd.f32 %v1644_v35, %v1643_v34 }
 0xfa1   :  { %v1656_v39 = vsel %vm241_vm4, %v1654_v36, 0.0 }
 0xfa2   :  { %v1646_v40 = vrot.slane %v1645_v13, 4  ;;  %v1657_v41 = vadd.f32 %v1656_v39, %v1655_v38  ;;  %v2955_v38 = vld [vmem:[#allocation8 + $0x48] sm:$0xff]  }
 0xfa4   :  { %v1647_v44 = vadd.f32 %v1646_v40, %v1645_v13  ;;  %v1658_v42 = vrot.slane %v1657_v41, 4  ;;  %v2954_v13 = vld [vmem:[#allocation8 + $0x40] sm:$0xff]  }
 0xfa6   :  { %v1648_v45 = vrot.slane %v1647_v44, 2  ;;  %v1659_v47 = vadd.f32 %v1658_v42, %v1657_v41 }
 0xfa8   :  { %v1649_v37 = vadd.f32 %v1648_v45, %v1647_v44  ;;  %v1660_v48 = vrot.slane %v1659_v47, 2 }
 0xfaa   :  { %v1650_v49 = vrot.slane %v1649_v37, 1  ;;  %v1661_v50 = vadd.f32 %v1660_v48, %v1659_v47 }
 0xfac   :  { %v1651_v51 = vadd.f32 %v1650_v49, %v1649_v37  ;;  %v1662_v53 = vrot.slane %v1661_v50, 1  ;;  %v2956_v49 = vld [vmem:[#allocation11 + $0x20] sm:$0xff]  }
 0xfae   :  { %v1652_v54 = vmul.f32 0.0625, %v1651_v51  ;;  %v1663_v57 = vadd.f32 %v1662_v53, %v1661_v50 }
 0xfb0   :  { %v1664_v62 = vmul.f32 0.0625, %v1663_v57  ;;  %v1665_v2 = vmul.f32 %v1652_v54, %v1652_v54  ;;  %v1668_v60 = vsub.f32 %v1641_v24, %v1652_v54  ;;  %v1669_v61 = vsub.f32 %v1642_v33, %v1652_v54 }
 0xfb2   :  { %v1666_v63 = vsub.f32 %v1664_v62, %v1665_v2 }
 0xfb4   :  { %v1667_v1 = vmax.f32 %v1666_v63, 0.0 }
 0xfb6   :  { %v1670_v3 = vadd.f32 1e-05, %v1667_v1 }
 0xfb8   :  { %2974 = vrsqrt.f32 %v1670_v3 }
 0xfc2   :  { %v2975_v5 = vpop.eup %2974 }
 0xfc3   :  { %v1673_v7 = vmul.f32 %v2975_v5, %v1669_v61  ;;  %v1672_v8 = vmul.f32 %v2975_v5, %v1668_v60 }
 0xfc5   :  { %v1679_v10 = vmul.f32 %v3375_v18, %v1673_v7  ;;  %v1678_v11 = vmul.f32 %v3375_v18, %v1672_v8  ;;  %v1459_v18 = vpack.c.bf16 %v3545_v59, %v3545_v59 }
 0xfc7   :  { %v1684_v14 = vadd.f32 %v3377_v21, %v1678_v11  ;;  %v1685_v12 = vadd.f32 %v3377_v21, %v1679_v10 }
 0xfc9   :  { %v1686_v15 = vpack.c.bf16 %v1685_v12, %v1684_v14 }
 0xfcb   :  { %2820 = vmatpush3.bf16.msra.mxu0 %v1686_v15 }
 0xfcc   :  { %2833 = vmatprep.subr.bf16.mxu0 %v3149_v0 }
 0xfce   :  { %2822 = vmatmul.mubr.msk.bf16.vlgmr.msra.gmra.mrb[44].mxu0 %vm114_vm1, %v3337_v9 }
 0xfcf   :  { %2834 = vmatpush3.bf16.msra.mxu0 %v2948_v16  ;;  %2837 = vmatprep.mubr.msk.bf16.mxu0 %vm3150_vm0, %v3149_v0 }
 0xfd0   :  { %2835 = vmatprep.subr.bf16.mxu0 %v3149_v0 }
 0xfd3   :  { %2836 = vmatpush3.bf16.msra.mxu0 %v2949_v17 }
 0xfd4   :  { %2847 = vmatprep.subr.bf16.mxu0 %v3149_v0 }
 0xfd6   :  { %2838 = vmatmul.mubr.msk.bf16.vlgmr.msra.gmra.mrb[48].mxu0 %vm241_vm4, %v1459_v18 }
 0xfd7   :  { %2851 = vmatprep.mubr.msk.bf16.mxu0 %vm3150_vm0, %v3149_v0  ;;  %2848 = vmatpush3.bf16.msra.mxu0 %v2952_v25 }
 0xfd8   :  { %2849 = vmatprep.subr.bf16.mxu0 %v3149_v0 }
 0xfdb   :  { %2850 = vmatpush3.bf16.msra.mxu0 %v2953_v4 }
 0xfdc   :  { %2863 = vmatprep.subr.bf16.mxu0 %v3149_v0 }
0x10a1   :  { %v1721_v21 = vpop.f32.mrb[44].mxu0 }
0x10a2   :  { %v1727_v9 = vpack.c.bf16 %v1721_v21, %v1721_v21  ;;  %v2823_v19 = vpop.f32.mrb[45].mxu0 }
0x10a3   :  { %v1724_v20 = vpop.f32.mrb[46].mxu0 }
0x10a4   :  { %v2824_v22 = vpop.f32.mrb[47].mxu0  ;;  %2830 = vmatmul.mubr.msk.bf16.vlgmr.msra.gmra.mrb[48].mxu1 %vm241_vm4, %v1727_v9 }
0x10a5   :  { %2842 = vmatpush3.bf16.msra.mxu1 %v1686_v15  ;;  %2843 = vmatprep.mubr.msk.bf16.mxu1 %vm3150_vm0, %v3149_v0 }
0x10a6   :  { %2855 = vmatprep.subr.bf16.mxu1 %v3149_v0 }
0x10a9   :  { %v1836_v59 = vpop.f32.mrb[48].mxu0 }
0x10aa   :  { %v2839_v23 = vpop.f32.mrb[49].mxu0 }
0x10ab   :  { %v1839_v26 = vpop.f32.mrb[50].mxu0 }
0x10ac   :  { %v2840_v27 = vpop.f32.mrb[51].mxu0  ;;  %2844 = vmatmul.mubr.msk.bf16.vlgmr.msra.gmra.mrb[52].mxu1 %vm114_vm1, %v3533_v58 }
0x10ad   :  { %2859 = vmatprep.mubr.msk.bf16.mxu1 %vm3150_vm0, %v3149_v0  ;;  %2856 = vmatpush3.bf16.msra.mxu1 %v2954_v13  ;;  %v2957_v13 = vld [vmem:[#allocation11 + $0x28] sm:$0xff]  }
0x10ae   :  { %2857 = vmatprep.subr.bf16.mxu1 %v3149_v0 }
0x10b1   :  { %2858 = vmatpush3.bf16.msra.mxu1 %v2955_v38  ;;  %v2960_v38 = vld [vmem:[%s3699_s7 + $0x10] sm:$0xff]  }
0x10b2   :  { %2869 = vmatprep.subr.bf16.mxu1 %v3149_v0 }
0x1177   :  { %v1781_v29 = vpop.f32.mrb[48].mxu1 }
0x1178   :  { %v3591_v24 = vadd.f32 %v1836_v59, %v1781_v29  ;;  %v2831_v30 = vpop.f32.mrb[49].mxu1 }
0x1179   :  { %v1784_v31 = vpop.f32.mrb[50].mxu1 }
0x117a   :  { %v2832_v32 = vpop.f32.mrb[51].mxu1 }
0x117f   :  { %v1876_v33 = vpop.f32.mrb[52].mxu1 }
0x1180   :  { %v2845_v34 = vpop.f32.mrb[53].mxu1 }
0x1181   :  { %v1879_v58 = vpop.f32.mrb[54].mxu1 }
0x1182   :  { %v1895_v35 = vpack.c.bf16 %v1879_v58, %v1876_v33  ;;  %v2846_v36 = vpop.f32.mrb[55].mxu1 }
0x1183   :  { %v2987_v36 = vld [vmem:[#allocation2] sm:$0xf] }
0x1184   :  { %2852 = vmatmul.mubr.msk.bf16.vlgmr.msra.gmra.mrb[52].mxu0 %vm241_vm4, %v1895_v35 }
0x1185   :  { %2865 = vmatprep.mubr.msk.bf16.mxu0 %vm3150_vm0, %v3149_v0 }
0x1257   :  { %v1949_v39 = vpop.f32.mrb[52].mxu0 }
0x1258   :  { %v1950_v40 = vadd.f32 %v3412_v55, %v1949_v39  ;;  %v2853_v41 = vpop.f32.mrb[53].mxu0  ;;  %v2961_v39 = vld [vmem:[%s3699_s7 + $0x18] sm:$0xff]  }
0x1259   :  { %v1952_v44 = vpop.f32.mrb[54].mxu0  ;;  %v2963_v41 = vld [vmem:[%s3699_s7 + $0x28] sm:$0xff]  }
0x125a   :  { %v1953_v42 = vadd.f32 %v3412_v55, %v1952_v44  ;;  %v2854_v45 = vpop.f32.mrb[55].mxu0  ;;  %v1956_v47 = vmax.f32 %v1950_v40, 0.0  ;;  %v2962_v40 = vld [vmem:[%s3699_s7 + $0x20] sm:$0xff]  }
0x125c   :  { %v1957_v37 = vmax.f32 %v1953_v42, 0.0 }
0x125e   :  { %v1958_v48 = vpack.c.bf16 %v1957_v37, %v1956_v47 }
0x1260   :  { %2860 = vmatmul.mubr.msk.bf16.vlgmr.msra.gmra.mrb[56].mxu1 %vm241_vm4, %v1958_v48  ;;  %v2964_v48 = vld [vmem:[%s3699_s7 + $0x30] sm:$0xff]  }
0x1261   :  { %2873 = vmatprep.mubr.msk.bf16.mxu1 %vm3150_vm0, %v3149_v0  ;;  %2870 = vmatpush3.bf16.msra.mxu1 %v2956_v49  ;;  %v2965_v49 = vld [vmem:[%s3699_s7 + $0x38] sm:$0xff]  }
0x1262   :  { %2871 = vmatprep.subr.bf16.mxu1 %v3149_v0 }
0x1265   :  { %2872 = vmatpush3.bf16.msra.mxu1 %v2957_v13 }
0x1266   :  { %2897 = vmatprep.subr.mxu1 %v3149_v0 }
0x1333   :  { %v2012_v50 = vpop.f32.mrb[56].mxu1 }
0x1334   :  { %v2013_v51 = vadd.f32 %v3420_v6, %v2012_v50  ;;  %v2861_v53 = vpop.f32.mrb[57].mxu1 }
0x1335   :  { %v2015_v54 = vpop.f32.mrb[58].mxu1 }
0x1336   :  { %v2019_v57 = vmax.f32 %v2013_v51, 0.0  ;;  %v2016_v55 = vadd.f32 %v3420_v6, %v2015_v54  ;;  %v2862_v62 = vpop.f32.mrb[59].mxu1 }
0x1338   :  { %v2031_v2 = vmul.f32 %v2019_v57, %v2019_v57  ;;  %v2020_v60 = vmax.f32 %v2016_v55, 0.0  ;;  %v2021_v61 = vsel %vm241_vm4, %v2019_v57, 0.0 }
0x133a   :  { %v2022_v63 = vsel %vm241_vm4, %v2020_v60, 0.0  ;;  %v2032_v1 = vmul.f32 %v2020_v60, %v2020_v60  ;;  %v2033_v5 = vsel %vm241_vm4, %v2031_v2, 0.0 }
0x133b   :  { %v2023_v3 = vadd.f32 %v2022_v63, %v2021_v61 }
0x133c   :  { %v2034_v7 = vsel %vm241_vm4, %v2032_v1, 0.0 }
0x133d   :  { %v2024_v8 = vrot.slane %v2023_v3, 4  ;;  %v2035_v10 = vadd.f32 %v2034_v7, %v2033_v5  ;;  %v2275_v7 = vlaneseq }
0x133f   :  { %v2025_v11 = vadd.f32 %v2024_v8, %v2023_v3  ;;  %v2036_v14 = vrot.slane %v2035_v10, 4  ;;  %v2276_v8 = vshrl.u32 %v2275_v7, 7 }
0x1341   :  { %v2026_v12 = vrot.slane %v2025_v11, 2  ;;  %v2037_v15 = vadd.f32 %v2036_v14, %v2035_v10  ;;  %vm2277_vm5 = vcmp.lt.s32.totalorder %v2276_v8, 2 }
0x1343   :  { %v2027_v6 = vadd.f32 %v2026_v12, %v2025_v11  ;;  %v2038_v16 = vrot.slane %v2037_v15, 2  ;;  %v2546_v12 = vsel %vm2277_vm5, 1.0, %v3149_v0 }
0x1345   :  { %v2028_v17 = vrot.slane %v2027_v6, 1  ;;  %v2039_v18 = vadd.f32 %v2038_v16, %v2037_v15 }
0x1347   :  { %v2029_v21 = vadd.f32 %v2028_v17, %v2027_v6  ;;  %v2040_v9 = vrot.slane %v2039_v18, 1 }
0x1349   :  { %v2030_v19 = vmul.f32 0.0625, %v2029_v21  ;;  %v2041_v20 = vadd.f32 %v2040_v9, %v2039_v18  ;;  %v2366_v21 = vand.u32 127, %v2275_v7 }
0x134b   :  { %v2042_v22 = vmul.f32 0.0625, %v2041_v20  ;;  %v2043_v59 = vmul.f32 %v2030_v19, %v2030_v19  ;;  %v2046_v23 = vsub.f32 %v2019_v57, %v2030_v19  ;;  %v2047_v26 = vsub.f32 %v2020_v60, %v2030_v19 }
0x134c   :  { %vm2367_vm6 = vcmp.lt.s32.totalorder %v2366_v21, 2  ;;  %vm2370_vm7 = vcmp.eq.s32.totalorder %v2276_v8, %v2366_v21 }
0x134d   :  { %v2044_v27 = vsub.f32 %v2042_v22, %v2043_v59  ;;  %v2547_v9 = vsel %vm2367_vm6, 1.0, %v3149_v0  ;;  %v2548_v19 = vsel %vm2370_vm7, 1.0, %v3149_v0 }
0x134e   :  { %v2373_v20 = vmul.f32 %v2548_v19, %v2547_v9 }
0x134f   :  { %v2045_v25 = vmax.f32 %v2044_v27, 0.0 }
0x1351   :  { %v2048_v4 = vadd.f32 1e-05, %v2045_v25 }
0x1353   :  { %2976 = vrsqrt.f32 %v2048_v4 }
0x135d   :  { %v2977_v29 = vpop.eup %2976 }
0x135e   :  { %v2051_v30 = vmul.f32 %v2977_v29, %v2047_v26  ;;  %v2050_v31 = vmul.f32 %v2977_v29, %v2046_v23 }
0x1360   :  { %v2057_v32 = vmul.f32 %v3428_v52, %v2051_v30  ;;  %v2056_v33 = vmul.f32 %v3428_v52, %v2050_v31  ;;  %v2958_v52 = vld [vmem:[%s3699_s7] sm:$0xff]  }
0x1362   :  { %v2062_v34 = vadd.f32 %v3430_v56, %v2056_v33  ;;  %v2063_v58 = vadd.f32 %v3430_v56, %v2057_v32  ;;  %v2959_v56 = vld [vmem:[%s3699_s7 + $0x8] sm:$0xff]   ;;  %s3151_s7 = smov [#allocation12]  }
0x1363   :  { %s2412_s0 = sshll.u32 %s3151_s7, 4  ;;  %s2413_s0 = int_to_ptr.vmem [resolvable:$true] %s2412_s0 }
0x1364   :  { %v2064_v35 = vpack.c.bf16 %v2063_v58, %v2062_v34  ;;  %s3098_s22 = scalar_lea.vmem %s2413_s0, 256  ;;  %p3103_p13 = scmp.lt.s32.totalorder %s2413_s0, %s2413_s0 }
0x1365   :  { %p3099_p12 = scmp.ne.s32.totalorder %s2413_s0, %s3098_s22  ;;  %p3104_p0 = scmp.lt.s32.totalorder %s3098_s22, %s3098_s22 }
0x1366   :  { %2864 = vmatpush3.bf16.msra.mxu0 %v2064_v35 }
0x1367   :  { %2877 = vmatprep.subr.bf16.mxu0 %v3149_v0  ;;  %p3105_p1 = por %p3104_p0, %p3103_p13 }
0x1369   :  { %2866 = vmatmul.mubr.msk.bf16.vlgmr.msra.gmra.mrb[56].mxu0 %vm114_vm1, %v2987_v36  ;;  %p3106_p2 = pnand %p3105_p1, %p3099_p12 }
0x136a   :  { %2893 = vmatprep.mubr.msk.bf16.mxu0 %vm3150_vm0, %v3149_v0  ;;  %2878 = vmatpush3.bf16.msra.mxu0 %v2958_v52 }
0x136b   :  { %2879 = vmatprep.subr.bf16.mxu0 %v3149_v0 }
0x136e   :  { %2880 = vmatpush3.bf16.msra.mxu0 %v2959_v56 }
0x136f   :  { %2881 = vmatprep.subr.bf16.mxu0 %v3149_v0 }
0x1372   :  { %2882 = vmatpush3.bf16.msra.mxu0 %v2960_v38 }
0x1373   :  { %2883 = vmatprep.subr.bf16.mxu0 %v3149_v0 }
0x1376   :  { %2884 = vmatpush3.bf16.msra.mxu0 %v2961_v39 }
0x1377   :  { %2885 = vmatprep.subr.bf16.mxu0 %v3149_v0 }
0x137a   :  { %2886 = vmatpush3.bf16.msra.mxu0 %v2962_v40 }
0x137b   :  { %2887 = vmatprep.subr.bf16.mxu0 %v3149_v0 }
0x137e   :  { %2888 = vmatpush3.bf16.msra.mxu0 %v2963_v41 }
0x137f   :  { %2889 = vmatprep.subr.bf16.mxu0 %v3149_v0 }
0x1382   :  { %2890 = vmatpush3.bf16.msra.mxu0 %v2964_v48 }
0x1383   :  { %2891 = vmatprep.subr.bf16.mxu0 %v3149_v0 }
0x1386   :  { %2892 = vmatpush3.bf16.msra.mxu0 %v2965_v49 }
0x143c   :  { %v2099_v44 = vpop.f32.mrb[56].mxu0 }
0x143d   :  { %v2105_v42 = vpack.c.bf16 %v2099_v44, %v2099_v44  ;;  %v2867_v45 = vpop.f32.mrb[57].mxu0 }
0x143e   :  { %v2102_v47 = vpop.f32.mrb[58].mxu0 }
0x143f   :  { %v2868_v37 = vpop.f32.mrb[59].mxu0  ;;  %2874 = vmatmul.mubr.msk.bf16.vlgmr.msra.gmra.mrb[60].mxu1 %vm241_vm4, %v2105_v42 }
0x1440   :  { %2899 = vmatprep.mubr.msk.f32.mxu1 %vm3150_vm0, %v3149_v0 }
0x1512   :  { %v2159_v50 = vpop.f32.mrb[60].mxu1 }
0x1513   :  { %v2165_v51 = vadd.f32 %v2159_v50, %v3591_v24  ;;  %v2875_v53 = vpop.f32.mrb[61].mxu1  ;;  %v2280_v24 = vmul.f32 %v3510_v46, %v3510_v46 }
0x1514   :  { %v2162_v54 = vpop.f32.mrb[62].mxu1 }
0x1515   :  { %v2166_v57 = vadd.f32 %v3493_v28, %v2165_v51  ;;  %v2876_v55 = vpop.f32.mrb[63].mxu1 }
0x1517   :  { %v2167_v62 = vmax.f32 %v2166_v57, 0.0 }
0x1519   :  { %v2168_v2 = vpack.c.bf16 %v2167_v62, %v2167_v62 }
0x151b   :  { %2894 = vmatmul.mubr.bf16.vlgmr.msra.gmra.mrb[60].mxu0 %v2168_v2 }
0x15ee   :  { %v2267_v60 = vpop.f32.mrb[60].mxu0 }
0x15ef   :  { %v2268_v61 = vadd.f32 %v3507_v43, %v2267_v60  ;;  %v2895_v63 = vpop.f32.mrb[61].mxu0 }
0x15f0   :  { %v2270_v1 = vpop.f32.mrb[62].mxu0 }
0x15f1   :  { %2274 = vst [vmem:[#allocation12 + $0x8] sm:$0xff] %v2268_v61  ;;  %v2896_v3 = vpop.f32.mrb[63].mxu0  ;;  %v2287_v5 = vmul.f32 %v2268_v61, %v2268_v61 }
0x15f3   :  { %2288 = vadd.xlane.f32.xlu0 %v2287_v5 }
0x15f7   :  { %2281 = vadd.xlane.f32.xlu0 %v2280_v24 }
0x1680   :  { %v2289_v28 = vpop.xlane.xlu0 %2288 }
0x1681   :  { %v2290_v10 = vsel %vm2277_vm5, %v2289_v28, 1.0 }
0x1682   :  { %2978 = vrsqrt.f32 %v2290_v10 }
0x1684   :  { %v2282_v11 = vpop.xlane.xlu0 %2281 }
0x1685   :  { %v2283_v14 = vsel %vm2277_vm5, %v2282_v11, 1.0 }
0x1686   :  { %2980 = vrsqrt.f32 %v2283_v14 }
0x168c   :  { %v2979_v43 = vpop.eup %2978 }
0x168d   :  { %v2292_v15 = vmul.f32 %v2979_v43, %v2268_v61 }
0x168f   :  { %v2293_v6 = vmul.f32 %v2546_v12, %v2292_v15 }
0x1690   :  { %v2981_v16 = vpop.eup %2980 }
0x1691   :  { %2898 = vmatpush3.xpose.msra.mxu1 %v2293_v6  ;;  %v2285_v17 = vmul.f32 %v2981_v16, %v3510_v46 }
0x1693   :  { %v2286_v18 = vmul.f32 %v2546_v12, %v2285_v17 }
0x1695   :  { %2900 = vmatmul.mubr.f32.vlgmr.msra.gmra.mrb[64].mxu1 %v2286_v18 }
0x1768   :  { %v2360_v22 = vpop.f32.mrb[64].mxu1 }
0x1769   :  { %v2364_v59 = vmul.f32 5.0, %v2360_v22  ;;  %v2901_v23 = vpop.f32.mrb[65].mxu1 }
0x176b   :  { %v2374_v26 = vmul.f32 1.442695, %v2364_v59  ;;  %v2381_v27 = vmul.f32 %v2373_v20, %v2364_v59 }
0x176d   :  { %2982 = vpow2.f32 %v2374_v26  ;;  %v2382_v25 = vsel %vm173_vm3, %v2381_v27, 0.0 }
0x176e   :  { %2383 = vadd.xlane.f32.xlu0 %v2382_v25 }
0x1777   :  { %v2983_v46 = vpop.eup %2982 }
0x1778   :  { %v2376_v4 = vmul.f32 %v2983_v46, %v2547_v9 }
0x177a   :  { %v2377_v29 = vmul.f32 %v2376_v4, %v2373_v20  ;;  %v2385_v31 = vsel %vm173_vm3, %v2376_v4, 0.0 }
0x177c   :  { %v2378_v30 = vsel %vm173_vm3, %v2377_v29, 0.0 }
0x177d   :  { %2379 = vadd.xlane.f32.xlu1 %v2378_v30 }
0x1781   :  { %2386 = vadd.xlane.f32.xlu1 %v2385_v31 }
0x17fb   :  { %v2384_v35 = vpop.xlane.xlu0 %2383 }
0x180a   :  { %v2380_v0 = vpop.xlane.xlu1 %2379 }
0x180e   :  { %v2387_v32 = vpop.xlane.xlu1 %2386 }
0x180f   :  { %v2388_v33 = vsub.f32 %v2387_v32, %v2380_v0 }
0x1811   :  { %2984 = vlog2.f32 %v2388_v33 }
0x181b   :  { %v2985_v34 = vpop.eup %2984 }
0x181c   :  { %v2390_v58 = vmul.f32 0.6931472, %v2985_v34 }
0x181e   :  { %v2391_v36 = vsub.f32 %v2390_v58, %v2384_v35 }
0x1820   :  { %v2392_v13 = vmul.f32 %v2546_v12, %v2391_v36 }
0x1822   :  { %v2394_v52 = vsel %vm2393_vm8, %v2392_v13, 0.0 }
0x1823   :  { %2395 = vadd.xlane.f32.xlu1 %v2394_v52 }
0x1824   :  { %3109 = shalt.err (!%p3106_p2)
}
0x1825   :  { %s3110_s15 = scalar_lea.hbm %s3701_s9, 256 }
0x1826   :  { %p3111_p3 = scmp.ne.s32.totalorder %s3701_s9, %s3110_s15  ;;  %p3114_p4 = scmp.lt.u32.totalorder %s3110_s15, %s3701_s9 }
0x1828   :  { %p3116_p5 = pnand %p3114_p4, %p3111_p3 }
0x182a   :  { %3119 = shalt.err (!%p3116_p5)
}
0x182b   :  { %2418 = dma.vmem_to_hbm [thread:$0]  %s2413_s0, 256, %s3701_s9, [#allocation4], %s3142_s3, %s3142_s3, %s3143_s14  }
0x182c   :  { %s3120_s25 = scalar_lea.hbm %s3702_s10, 16 }
0x182d   :  { %p3121_p6 = scmp.ne.s32.totalorder %s3702_s10, %s3120_s25  ;;  %p3124_p7 = scmp.lt.u32.totalorder %s3120_s25, %s3702_s10 }
0x182f   :  { %p3126_p8 = pnand %p3124_p7, %p3121_p6 }
0x18b0   :  { %v2396_v56 = vpop.xlane.xlu1 %2395 }
0x18b1   :  { %v2397_v38 = vrot.slane %v2396_v56, 4 }
0x18b3   :  { %v2398_v39 = vadd.f32 %v2397_v38, %v2396_v56 }
0x18b5   :  { %v2399_v40 = vrot.slane %v2398_v39, 2 }
0x18b7   :  { %v2400_v41 = vadd.f32 %v2399_v40, %v2398_v39 }
0x18b9   :  { %v2401_v44 = vrot.slane %v2400_v41, 1 }
0x18bb   :  { %v2402_v42 = vadd.f32 %v2401_v44, %v2400_v41 }
0x18bd   :  { %2902 = vpush %v2402_v42 }
0x18ee   :  { %s2903_s2 = spop %2902 }
0x18ef   :  { %s2404_s20 = smul.f32 0.5, %s2903_s2 }
0x18f1   :  { %2406 = sst [smem:[#allocation13]] %s2404_s20 }
0x18f2   :  { %3129 = shalt.err (!%p3126_p8)
}
0x18f3   :  { %s3152_s14 = smov [#allocation13]  }
0x18f4   :  { %2426 = dma.smem_to_hbm %s3152_s14, 16, %s3702_s10, [#allocation5]  }
0x18f5   :  { %3136 = dma.done.wait [#allocation4], 256  }
0x18f6   :  { %3137 = vsyncadd [#allocation4], 4294967040 }
0x18f7   :  { %3138 = dma.done.wait [#allocation5], 16  }
0x18f8   :  { %3139 = vsyncadd [#allocation5], 4294967280 }
0x18f9   :  { %2433 = sfence }
0x18fa   :  { %2434 = vsyncpa [#allocation3], 1 }
0x18fb   :  { %2435 = vsyncpa [#allocation7], 1 }
0x18fc   :  { %2436 = vsyncpa [#allocation10], 1 }
0x18fd   :  { %2437 = vsyncpa [#allocation4], 1 }
0x18fe   :  { %2438 = vsyncpa [#allocation5], 1 }

</bundles_post_ra>
